<compile_context>
chip_gen: v6e
topology: v6e:2x2x1
jax: 0.10.0
libtpu: 0.0.40
codegen_flags: <defaults>
</compile_context>

<pallas_src>
import functools

import jax
import jax.numpy as jnp
from jax.experimental import pallas as pl
from jax.experimental.pallas import tpu as pltpu


def _round_up(a, b):
    return (a + b - 1) // b * b


# --------------------------------------------------------------------------
# Pallas matmul kernel: (M,K)bf16 @ (K,N)bf16 + f32 bias, optional fused ReLU
# --------------------------------------------------------------------------
def _mm_kernel(x_ref, w_ref, b_ref, o_ref, acc_ref, *, relu):
    @pl.when(pl.program_id(2) == 0)
    def _():
        acc_ref[...] = jnp.zeros_like(acc_ref)

    acc_ref[...] += jnp.dot(x_ref[...], w_ref[...],
                            preferred_element_type=jnp.float32)

    @pl.when(pl.program_id(2) == pl.num_programs(2) - 1)
    def _():
        r = acc_ref[...] + b_ref[...]          # f32 epilogue (v5e-safe)
        if relu:
            r = jnp.maximum(r, 0.0)
        o_ref[...] = r.astype(o_ref.dtype)


_MM_CACHE = {}


def _get_mm_call(Mp, Kp, Np, tm, tk, tn, relu, out_dtype):
    key = (Mp, Kp, Np, tm, tk, tn, relu, out_dtype)
    if key not in _MM_CACHE:
        _MM_CACHE[key] = pl.pallas_call(
            functools.partial(_mm_kernel, relu=relu),
            out_shape=jax.ShapeDtypeStruct((Mp, Np), out_dtype),
            grid_spec=pltpu.PrefetchScalarGridSpec(
                num_scalar_prefetch=0,
                grid=(Mp // tm, Np // tn, Kp // tk),
                in_specs=[
                    pl.BlockSpec((tm, tk), lambda i, j, k: (i, k)),
                    pl.BlockSpec((tk, tn), lambda i, j, k: (k, j)),
                    pl.BlockSpec((1, tn), lambda i, j, k: (0, j)),
                ],
                out_specs=pl.BlockSpec((tm, tn), lambda i, j, k: (i, j)),
                scratch_shapes=[pltpu.VMEM((tm, tn), jnp.float32)],
            ),
            compiler_params=pltpu.CompilerParams(
                dimension_semantics=("parallel", "parallel", "arbitrary"),
                vmem_limit_bytes=32 * 1024 * 1024),
        )
    return _MM_CACHE[key]


def _choose_tiles(M, K, N):
    """Per-layer tile selection.

    Keeps the bf16 x-tile and w-tile each under ~4 MiB so the double-buffered
    working set stays well below 32 MiB scoped VMEM (v5e/v6e/v7x safe), while
    minimising grid steps (large tm for the big conv layers, tiny tm for the
    M=2 fc/score head layers)."""
    # N (lane) tile: <=512 wide, multiple of the 128-lane vreg / 256-wide MXU.
    Np0 = _round_up(N, 128)
    tn = min(Np0, 512)
    Np = _round_up(N, tn)
    # K tile: bf16 weight tile (tk, tn) <= ~4 MiB.
    Kp0 = _round_up(K, 128)
    tk_cap = max(128, ((4 << 20) // (2 * tn)) // 128 * 128)
    if Kp0 <= tk_cap:
        tk = Kp0
    else:
        nk = -(-Kp0 // tk_cap)
        tk = _round_up(-(-Kp0 // nk), 128)
    Kp = _round_up(K, tk)
    # M tile: single small block for the tiny-M head layers, otherwise as large
    # as the ~4 MiB bf16 x-tile budget allows (fewer grid steps).
    if M <= 512:
        tm = _round_up(M, 16)
    else:
        tm_cap = max(256, ((4 << 20) // (2 * tk)) // 128 * 128)
        tm = min(2048, tm_cap)
    Mp = _round_up(M, tm)
    return tm, tk, tn, Mp, Kp, Np


def matmul_bias_act(x, w, b=None, *, relu=False, out_dtype=jnp.bfloat16):
    M, K = x.shape
    K2, N = w.shape
    assert K == K2
    tm, tk, tn, Mp, Kp, Np = _choose_tiles(M, K, N)
    x = x.astype(jnp.bfloat16)
    w = w.astype(jnp.bfloat16)
    if (Mp, Kp) != (M, K):
        x = jnp.pad(x, ((0, Mp - M), (0, Kp - K)))
    if (Kp, Np) != (K, N):
        w = jnp.pad(w, ((0, Kp - K), (0, Np - N)))
    if b is None:
        bp = jnp.zeros((1, Np), jnp.float32)
    else:
        bp = b.astype(jnp.float32).reshape(1, N)
        if Np != N:
            bp = jnp.pad(bp, ((0, 0), (0, Np - N)))
    out = _get_mm_call(Mp, Kp, Np, tm, tk, tn, relu, out_dtype)(x, w, bp)
    if (Mp, Np) != (M, N):
        out = out[:M, :N]
    return out


# --------------------------------------------------------------------------
# Pallas max-pool kernel (2x2, stride 2, ceil_mode=True) as max of 4 slices
# --------------------------------------------------------------------------
def _max4_kernel(a_ref, b_ref, c_ref, d_ref, o_ref):
    o_ref[...] = jnp.maximum(jnp.maximum(a_ref[...], b_ref[...]),
                             jnp.maximum(c_ref[...], d_ref[...]))


_POOL_CACHE = {}


def _get_pool_call(Mp, Cp, bm, dtype):
    key = (Mp, Cp, bm, str(dtype))
    if key not in _POOL_CACHE:
        spec = pl.BlockSpec((bm, Cp), lambda i: (i, 0))
        _POOL_CACHE[key] = pl.pallas_call(
            _max4_kernel,
            out_shape=jax.ShapeDtypeStruct((Mp, Cp), dtype),
            grid=(Mp // bm,),
            in_specs=[spec] * 4,
            out_specs=spec,
            compiler_params=pltpu.CompilerParams(
                dimension_semantics=("parallel",)),
        )
    return _POOL_CACHE[key]


def maxpool2x2_ceil(x):
    """2x2 / stride-2 max pool, ceil_mode=True.  x: (N, H, W, C) NHWC."""
    N, H, W, C = x.shape
    Ho, Wo = -(-H // 2), -(-W // 2)
    ph, pw = 2 * Ho - H, 2 * Wo - W
    if ph or pw:
        x = jnp.pad(x, ((0, 0), (0, ph), (0, pw), (0, 0)),
                    constant_values=-jnp.inf)
    a = x[:, 0::2, 0::2, :].reshape(-1, C)
    b = x[:, 0::2, 1::2, :].reshape(-1, C)
    c = x[:, 1::2, 0::2, :].reshape(-1, C)
    d = x[:, 1::2, 1::2, :].reshape(-1, C)
    M = a.shape[0]
    bm = min(1024, _round_up(M, 16))
    Mp, Cp = _round_up(M, bm), _round_up(C, 128)
    if (Mp, Cp) != (M, C):
        pad = ((0, Mp - M), (0, Cp - C))
        a, b, c, d = (jnp.pad(t, pad) for t in (a, b, c, d))
    out = _get_pool_call(Mp, Cp, bm, a.dtype)(a, b, c, d)
    return out[:M, :C].reshape(N, Ho, Wo, C)


# --------------------------------------------------------------------------
# Conv / transposed-conv wrappers (glue in JAX, matmul in Pallas)
# --------------------------------------------------------------------------
def conv2d(x, w, b=None, *, padding=0, relu=False, out_dtype=jnp.bfloat16):
    """x: (N,H,W,Cin), w: (KH,KW,Cin,Cout).  Stride-1 cross-correlation."""
    N, H, W, C = x.shape
    KH, KW, Cin, Cout = w.shape
    assert C == Cin
    if padding:
        x = jnp.pad(x, ((0, 0), (padding, padding), (padding, padding), (0, 0)))
    Hp, Wp = x.shape[1], x.shape[2]
    Ho, Wo = Hp - KH + 1, Wp - KW + 1
    if KH == 1 and KW == 1:
        patches = x.reshape(N * Ho * Wo, C)
    else:
        # slice+concat im2col; K layout (kh, kw, c) matches w.reshape below.
        # TODO(synk): a fused halo-tiled Pallas conv kernel would avoid
        # materialising this KH*KW-times-inflated patch matrix in HBM.
        taps = [x[:, dy:dy + Ho, dx:dx + Wo, :]
                for dy in range(KH) for dx in range(KW)]
        patches = jnp.concatenate(taps, axis=-1).reshape(N * Ho * Wo, KH * KW * C)
    out = matmul_bias_act(patches, w.reshape(KH * KW * Cin, Cout), b,
                          relu=relu, out_dtype=out_dtype)
    return out.reshape(N, Ho, Wo, Cout)


def conv_transpose2d(x, w, *, stride):
    """Transposed conv, no bias, PyTorch semantics (kernel_size == 2*stride).

    w: (Cin, KH, KW, Cout) == PyTorch ConvTranspose2d weight (Cin,Cout,KH,KW)
    transposed to (0,2,3,1) -- no spatial flip needed in this formulation.
    One small Pallas matmul produces the per-input-pixel (KH,KW,Cout) outer
    products; a 4-way overlap-add (tiny XLA glue) scatters them into the
    output.  This avoids the zero-dilated im2col entirely."""
    N, H, W, Cin = x.shape
    Cin2, KH, KW, Cout = w.shape
    assert Cin == Cin2 and KH == 2 * stride and KW == 2 * stride
    s = stride
    Ho, Wo = (H - 1) * s + KH, (W - 1) * s + KW          # == (H+1)*s, (W+1)*s
    y = matmul_bias_act(x.reshape(N * H * W, Cin),
                        w.reshape(Cin, KH * KW * Cout),
                        None, relu=False, out_dtype=jnp.float32)
    y = y.reshape(N, H, W, 2, s, 2, s, Cout)             # (n,iy,ix,a,p,b,q,co)
    out = jnp.zeros((N, Ho, Wo, Cout), jnp.float32)
    for a in range(2):
        for b_ in range(2):
            blk = y[:, :, :, a, :, b_, :, :]             # (N,H,W,s,s,Cout)
            blk = blk.transpose(0, 1, 3, 2, 4, 5).reshape(N, H * s, W * s, Cout)
            out = out.at[:, a * s:a * s + H * s, b_ * s:b_ * s + W * s, :].add(blk)
    return out


# --------------------------------------------------------------------------
# Parameter init (deterministic, synthetic) + forward pass
# --------------------------------------------------------------------------
def init_params(key, num_classes):
    params = {}

    def conv_init(name, kh, kw, cin, cout):
        nonlocal key
        key, wk, bk = jax.random.split(key, 3)
        scale = (2.0 / (kh * kw * cin)) ** 0.5
        params[name] = (
            (jax.random.normal(wk, (kh, kw, cin, cout), jnp.float32) * scale
             ).astype(jnp.bfloat16),
            jax.random.normal(bk, (cout,), jnp.float32) * 0.01,
        )

    def deconv_init(name, k, c):
        nonlocal key
        key, wk = jax.random.split(key)
        scale = (1.0 / (k * k * c)) ** 0.5
        # (Cin, KH, KW, Cout) = PyTorch ConvTranspose2d weight transposed (0,2,3,1)
        params[name] = (jax.random.normal(wk, (c, k, k, c), jnp.float32) * scale
                        ).astype(jnp.bfloat16)

    # VGG16 feature convs
    conv_init("conv1_1", 3, 3, 3, 64);    conv_init("conv1_2", 3, 3, 64, 64)
    conv_init("conv2_1", 3, 3, 64, 128);  conv_init("conv2_2", 3, 3, 128, 128)
    conv_init("conv3_1", 3, 3, 128, 256); conv_init("conv3_2", 3, 3, 256, 256)
    conv_init("conv3_3", 3, 3, 256, 256)
    conv_init("conv4_1", 3, 3, 256, 512); conv_init("conv4_2", 3, 3, 512, 512)
    conv_init("conv4_3", 3, 3, 512, 512)
    conv_init("conv5_1", 3, 3, 512, 512); conv_init("conv5_2", 3, 3, 512, 512)
    conv_init("conv5_3", 3, 3, 512, 512)
    # classifier-as-conv
    conv_init("fc6", 7, 7, 512, 4096)
    conv_init("fc7", 1, 1, 4096, 4096)
    # score heads (original zero-inits these; random here for a non-trivial run)
    conv_init("score_fr", 1, 1, 4096, num_classes)
    conv_init("score_pool4", 1, 1, 512, num_classes)
    # transposed convs (bias=False)
    deconv_init("upscore2", 4, num_classes)
    deconv_init("upscore16", 32, num_classes)
    return params


def fcn16_forward(params, x_nchw):
    # layout: input NCHW -> internal NHWC bf16 -> output NCHW f32
    x = jnp.transpose(x_nchw, (0, 2, 3, 1)).astype(jnp.bfloat16)
    Hin, Win = x.shape[1], x.shape[2]

    h = conv2d(x, *params["conv1_1"], padding=100, relu=True)
    h = conv2d(h, *params["conv1_2"], padding=1, relu=True)
    h = maxpool2x2_ceil(h)
    h = conv2d(h, *params["conv2_1"], padding=1, relu=True)
    h = conv2d(h, *params["conv2_2"], padding=1, relu=True)
    h = maxpool2x2_ceil(h)
    for n in ("conv3_1", "conv3_2", "conv3_3"):
        h = conv2d(h, *params[n], padding=1, relu=True)
    h = maxpool2x2_ceil(h)
    for n in ("conv4_1", "conv4_2", "conv4_3"):
        h = conv2d(h, *params[n], padding=1, relu=True)
    pool4 = maxpool2x2_ceil(h)                       # features4 output
    h = pool4
    for n in ("conv5_1", "conv5_2", "conv5_3"):
        h = conv2d(h, *params[n], padding=1, relu=True)
    pool5 = maxpool2x2_ceil(h)                       # features5 output

    # score_fr head: fc6 -> ReLU -> Dropout(id) -> fc7 -> ReLU -> Dropout(id) -> score_fr
    h = conv2d(pool5, *params["fc6"], padding=0, relu=True)
    h = conv2d(h, *params["fc7"], padding=0, relu=True)
    score_fr = conv2d(h, *params["score_fr"], padding=0, relu=False)

    upscore2 = conv_transpose2d(score_fr, params["upscore2"], stride=2)

    # score_pool4(0.01 * pool4) == conv(pool4, 0.01*W) + b : fold scale into W
    w_sp4, b_sp4 = params["score_pool4"]
    w_sp4 = (w_sp4.astype(jnp.float32) * 0.01).astype(jnp.bfloat16)
    score_pool4 = conv2d(pool4, w_sp4, b_sp4, padding=0, relu=False)

    Hu, Wu = upscore2.shape[1], upscore2.shape[2]
    fused = score_pool4[:, 5:5 + Hu, 5:5 + Wu, :].astype(jnp.float32) + upscore2
    upscore16 = conv_transpose2d(fused, params["upscore16"], stride=16)

    out = upscore16[:, 27:27 + Hin, 27:27 + Win, :]
    return jnp.transpose(out, (0, 3, 1, 2))          # back to NCHW, f32


if __name__ == "__main__":
    num_classes = 5
    key = jax.random.PRNGKey(0)
    pkey, xkey = jax.random.split(key)
    params = init_params(pkey, num_classes)
    x = jax.random.normal(xkey, (2, 3, 16, 16), jnp.float32)   # NCHW like PyTorch
    out = jax.block_until_ready(fcn16_forward(params, x))
    assert out.shape == (2, num_classes, 16, 16), out.shape
    assert bool(jnp.all(jnp.isfinite(out)))
    print("KERNEL_OK")
</pallas_src>

<mosaic_0001>
module attributes {stable_mosaic.version = 11 : i64} {
  func.func @_mm_kernel(%arg0: i32, %arg1: i32, %arg2: i32, %arg3: memref<2048x128xbf16, #tpu.memory_space<vmem>>, %arg4: memref<128x128xbf16, #tpu.memory_space<vmem>>, %arg5: memref<1x128xf32, #tpu.memory_space<vmem>>, %arg6: memref<2048x128xbf16, #tpu.memory_space<vmem>>, %arg7: memref<2048x128xf32, #tpu.memory_space<vmem>>) attributes {dimension_semantics = [#tpu.dimension_semantics<parallel>, #tpu.dimension_semantics<parallel>, #tpu.dimension_semantics<arbitrary>], iteration_bounds = array<i64: 45, 1, 1>, scalar_prefetch = 0 : i64, scratch_operands = 1 : i64, tpu.core_type = #tpu.core_type<tc>, window_params = [{transform_indices = @transform_0, window_bounds = array<i64: 2048, 128>}, {transform_indices = @transform_1, window_bounds = array<i64: 128, 128>}, {transform_indices = @transform_2, window_bounds = array<i64: 1, 128>}, {transform_indices = @transform_3, window_bounds = array<i64: 2048, 128>}]} {
    %c0_i32 = arith.constant 0 : i32
    %0 = arith.cmpi eq, %arg2, %c0_i32 : i32
    %1 = arith.extui %0 : i1 to i32
    %c0_i32_0 = arith.constant 0 : i32
    %2 = arith.cmpi ne, %1, %c0_i32_0 : i32
    scf.if %2 {
      %cst_10 = arith.constant 0.000000e+00 : f32
      %12 = vector.broadcast %cst_10 : f32 to vector<2048x128xf32>
      %c0_11 = arith.constant 0 : index
      %c0_12 = arith.constant 0 : index
      %13 = vector.load %arg7[%c0_11, %c0_12] : memref<2048x128xf32, #tpu.memory_space<vmem>>, vector<2048x128xf32>
      tpu.vector_store %arg7[%c0_11, %c0_12], %12 {strides = array<i32>} : memref<2048x128xf32, #tpu.memory_space<vmem>>, vector<2048x128xf32>,
    } else {
    }
    %c0 = arith.constant 0 : index
    %c0_1 = arith.constant 0 : index
    %3 = vector.load %arg7[%c0, %c0_1] : memref<2048x128xf32, #tpu.memory_space<vmem>>, vector<2048x128xf32>
    %c0_2 = arith.constant 0 : index
    %c0_3 = arith.constant 0 : index
    %4 = vector.load %arg3[%c0_2, %c0_3] : memref<2048x128xbf16, #tpu.memory_space<vmem>>, vector<2048x128xbf16>
    %c0_4 = arith.constant 0 : index
    %c0_5 = arith.constant 0 : index
    %5 = vector.load %arg4[%c0_4, %c0_5] : memref<128x128xbf16, #tpu.memory_space<vmem>>, vector<128x128xbf16>
    %cst = arith.constant dense<0.000000e+00> : vector<2048x128xf32>
    %6 = tpu.matmul %4, %5, %cst {dimension_numbers = #tpu.dot_dimension_numbers<[1], [0], [0], [1], [0, 0, 1, 1], [], []>} : vector<2048x128xbf16>, vector<128x128xbf16>, vector<2048x128xf32> -> vector<2048x128xf32>
    %7 = arith.addf %3, %6 : vector<2048x128xf32>
    %c0_6 = arith.constant 0 : index
    %c0_7 = arith.constant 0 : index
    %8 = vector.load %arg7[%c0_6, %c0_7] : memref<2048x128xf32, #tpu.memory_space<vmem>>, vector<2048x128xf32>
    tpu.vector_store %arg7[%c0_6, %c0_7], %7 {strides = array<i32>} : memref<2048x128xf32, #tpu.memory_space<vmem>>, vector<2048x128xf32>,
    %c0_i32_8 = arith.constant 0 : i32
    %9 = arith.cmpi eq, %arg2, %c0_i32_8 : i32
    %10 = arith.extui %9 : i1 to i32
    %c0_i32_9 = arith.constant 0 : i32
    %11 = arith.cmpi ne, %10, %c0_i32_9 : i32
    scf.if %11 {
      %c0_10 = arith.constant 0 : index
      %c0_11 = arith.constant 0 : index
      %12 = vector.load %arg7[%c0_10, %c0_11] : memref<2048x128xf32, #tpu.memory_space<vmem>>, vector<2048x128xf32>
      %c0_12 = arith.constant 0 : index
      %c0_13 = arith.constant 0 : index
      %13 = vector.load %arg5[%c0_12, %c0_13] : memref<1x128xf32, #tpu.memory_space<vmem>>, vector<1x128xf32>
      %14 = vector.broadcast %13 : vector<1x128xf32> to vector<2048x128xf32>
      %15 = arith.addf %12, %14 : vector<2048x128xf32>
      %cst_14 = arith.constant 0.000000e+00 : f32
      %16 = vector.broadcast %cst_14 : f32 to vector<2048x128xf32>
      %17 = arith.maximumf %15, %16 : vector<2048x128xf32>
      %18 = arith.truncf %17 : vector<2048x128xf32> to vector<2048x128xbf16>
      %c0_15 = arith.constant 0 : index
      %c0_16 = arith.constant 0 : index
      %19 = vector.load %arg6[%c0_15, %c0_16] : memref<2048x128xbf16, #tpu.memory_space<vmem>>, vector<2048x128xbf16>
      tpu.vector_store %arg6[%c0_15, %c0_16], %18 {strides = array<i32>} : memref<2048x128xbf16, #tpu.memory_space<vmem>>, vector<2048x128xbf16>,
    } else {
    }
    return
  }
  func.func @transform_0(%arg0: i32, %arg1: i32, %arg2: i32) -> (i32, i32) {
    %c0_i32 = arith.constant 0 : i32
    return %arg0, %arg2 : i32, i32
  }
  func.func @transform_1(%arg0: i32, %arg1: i32, %arg2: i32) -> (i32, i32) {
    %c0_i32 = arith.constant 0 : i32
    return %arg2, %arg1 : i32, i32
  }
  func.func @transform_2(%arg0: i32, %arg1: i32, %arg2: i32) -> (i32, i32) {
    %c0_i32 = arith.constant 0 : i32
    %c0_i32_0 = arith.constant 0 : i32
    return %c0_i32, %arg1 : i32, i32
  }
  func.func @transform_3(%arg0: i32, %arg1: i32, %arg2: i32) -> (i32, i32) {
    %c0_i32 = arith.constant 0 : i32
    return %arg0, %arg1 : i32, i32
  }
}

</mosaic_0001>

<bundles_post_ra>
// kernel: tpu_custom_call.1
= control target key start
LH: loop header
LB: loop body
LE: loop exit
PB: predicated region body
PF: predicated region fallthrough
CT: control target
= control target key end

     0   :  { %8 = vsyncpa [#allocation4], 0  ;;  %s8606_s0 = inlined_call_operand.hbm [shape: bf16[92160,128], index: 0, kind: input, shape index: {}]   ;;  %s8607_s1 = inlined_call_operand.hbm [shape: bf16[128,128], index: 1, kind: input, shape index: {}]   ;;  %s8608_s2 = inlined_call_operand.hbm [shape: f32[1,128], index: 2, kind: input, shape index: {}]   ;;  %s8609_s3 = inlined_call_operand.hbm [shape: bf16[92160,128], index: 3, kind: output, shape index: {}]  }
   0x1   :  { %10 = vsyncpa [#allocation4 + $0x1], 0 }
   0x2   :  { %11 = vsyncpa [#allocation7], 0 }
   0x3   :  { %12 = vsyncpa [#allocation5], 0 }
   0x4   :  { %14 = vsyncpa [#allocation5 + $0x1], 0  ;;  %s7901_s12 = smov 0   ;;  %s7903_s13 = smov 0  }
   0x5   :  { %s7905_s14 = smov 0   ;;  %s7907_s15 = smov 0  }
   0x6   :  { %s7909_s16 = smov 0   ;;  %s7911_s17 = smov 0  }
   0x7 LB: > { %s5621_s18 = sadd.s32 4294967295, %s7871_s17   ;;  %s5622_s19 = sadd.s32 4294967294, %s7871_s17   ;;  %s7871_s17 = sphi %s7911_s17, %s20_s17   ;;  %s7867_s16 = sphi %s7909_s16, %s8625_s16   ;;  %s7863_s15 = sphi %s7907_s15, %s8624_s15   ;;  %s7859_s14 = sphi %s7905_s14, %s8623_s14   ;;  %s7855_s13 = sphi %s7903_s13, %s8622_s13   ;;  %s7851_s12 = sphi %s7901_s12, %s8621_s12  }
   0x8   : > { %p61_p0 = scmp.ne.s32.totalorder %s7855_s13, %s7851_s12  ;;  %p7935_p1 = scmp.eq.s32.totalorder %s5621_s18, 0 }
   0x9   : > { %p7939_p2 = scmp.eq.s32.totalorder %s5621_s18, 44  ;;  %p147_p3 = scmp.eq.s32.totalorder %s5622_s19, 44 }
   0xa   : > { %p7945_p4 = por %p7935_p1, %p61_p0  ;;  %p5623_p5 = scmp.ge.s32.totalorder %s7871_s17, 1 }
   0xb   : > { %p7950_p6 = por %p147_p3, %p61_p0  ;;  %p154_p7 = scmp.lt.s32.totalorder %s7871_s17, 46 }
   0xc   : > { %s7873_s25 = smov [#allocation6]   ;;  %s7874_s28 = smov [#allocation8]  }
   0xd   : > { %s8614_s23 = scalar_select %p7950_p6, 1, 0 }
   0xe   : > { %p7955_p8 = pnand %p5623_p5, %p154_p7  ;;  %s170_s26 = sshll.u32 %s7873_s25, 4  ;;  %s171_s26 = int_to_ptr.vmem [resolvable:$true] %s170_s26 }
   0xf   : > { %s186_s29 = sshll.u32 %s7874_s28, 4  ;;  %s7718_s30 = scalar_lea.vmem %s171_s26, 1024  ;;  %s187_s29 = int_to_ptr.vmem [resolvable:$true] %s186_s29 }
  0x10   : > { %p7494_p9 = pneg %p7955_p8  ;;  %p7719_p12 = scmp.ne.s32.totalorder %s171_s26, %s7718_s30 }
  0x11   : > { %p7726_p3 = scmp.lt.s32.totalorder %s171_s26, %s171_s26  ;;  %p7727_p5 = scmp.lt.s32.totalorder %s7718_s30, %s7718_s30 }
  0x12   : > { %p7963_p10 = pnand %p7494_p9, %p7935_p1 }
  0x13   : > { %p7728_p7 = por %p7727_p5, %p7726_p3 }
  0x14   : > { %p7709_p11 = pneg %p7963_p10 }
  0x16   : > { %p7721_p13 = pnand %p7719_p12, %p7709_p11 }
  0x18   : > { %p7722_p0 = pneg %p7721_p13 }
  0x1a   : > { %p7729_p9 = pnand %p7728_p7, %p7722_p0 }
  0x1c   : > { %7732 = shalt.err (!%p7729_p9)
}
  0x1d   : > { %s8610_s4 = smov 64   ;;  %s7876_s5 = smov 4  }
  0x1e   : > { %7497 = dma.hbm_to_vmem [thread:$0]  (!%p7963_p10), %s8607_s1, 1024, %s171_s26, [#allocation7], %s8610_s4, %s8610_s4, %s7876_s5  }
  0x1f   : > { %s7744_s8 = scalar_lea.vmem %s187_s29, 16  ;;  %s7751_s9 = scalar_lea.vmem %s187_s29, 32 }
  0x20   : > { %p7745_p12 = scmp.ne.s32.totalorder %s187_s29, %s7744_s8  ;;  %p7752_p0 = scmp.lt.s32.totalorder %s187_s29, %s187_s29 }
  0x21   : > { %p7753_p5 = scmp.lt.s32.totalorder %s7751_s9, %s7744_s8 }
  0x22   : > { %p7747_p13 = pnand %p7745_p12, %p7709_p11 }
  0x23   : > { %p7754_p7 = por %p7753_p5, %p7752_p0 }
  0x24   : > { %p7748_p3 = pneg %p7747_p13 }
  0x26   : > { %p7755_p9 = pnand %p7754_p7, %p7748_p3 }
  0x28   : > { %7758 = shalt.err (!%p7755_p9)
}
  0x29   : > { %7500 = dma.hbm_to_vmem [thread:$0]  (!%p7963_p10), %s8608_s2, 16, %s187_s29, [#allocation7]  }
  0x2a   : > { %s39_s18 = sadd.s32 1, %s7867_s16  ;;  %s48_s19 = sadd.s32 1, %s7859_s14 }
  0x2b   : > { %p41_p11 = scmp.ge.s32.totalorder %s39_s18, 45  ;;  %p55_p12 = scmp.ne.s32.totalorder %s7859_s14, %s7855_s13 }
  0x2c   : > { %p56_p13 = scmp.eq.s32.totalorder %s7871_s17, 0  ;;  %p7511_p3 = scmp.lt.s32.totalorder %s7871_s17, 45 }
  0x2d   : > { %s8627_s18 = smov (%p41_p11, %s39_s18), 0  ;;  %p7998_p5 = por %p7939_p2, %p55_p12 }
  0x2e   : > { %p57_p0 = por %p56_p13, %p55_p12  ;;  %s43_s26 = ssub.s32 %s7867_s16, %s8627_s18 }
  0x2f   : > { %s197_s27 = sand.u32 1, %s7859_s14   ;;  %p46_p7 = scmp.eq.s32.totalorder %s43_s26, 0 }
  0x30   : > { %s5627_s28 = sshll.u32 %s197_s27, 10  ;;  %s6033_s29 = sshll.u32 %s7867_s16, 14 }
  0x31   : > { %s8007_s30 = scalar_select %p46_p7, %s7859_s14, %s48_s19  }
  0x32   : > { %s208_s8 = scalar_lea.hbm %s8606_s0, %s6033_s29  ;;  %s201_s9 = scalar_lea.vmem [#allocation3], %s5627_s28 }
  0x33   : > { %s209_s10 = sshll.u32 %s201_s9, 4  ;;  %p8014_p10 = pnand %p7511_p3, %p57_p0  ;;  %s210_s10 = int_to_ptr.vmem [resolvable:$true] %s209_s10 }
  0x34   : > { %s198_s11 = scalar_lea.sflag [#allocation4], %s197_s27  ;;  %s7772_s26 = scalar_lea.vmem %s210_s10, 16384 }
  0x35   : > { %p7761_p2 = pneg %p8014_p10  ;;  %p7773_p9 = scmp.ne.s32.totalorder %s210_s10, %s7772_s26 }
  0x36   : > { %s7877_s19 = smov [#allocation3]  }
  0x37   : > { %p7775_p11 = pnand %p7773_p9, %p7761_p2  ;;  %s7777_s4 = sshll.u32 %s7877_s19, 4  ;;  %s7778_s4 = int_to_ptr.vmem [resolvable:$false] %s7777_s4 }
  0x38   : > { %s7779_s29 = scalar_lea.vmem %s7778_s4, 32768  ;;  %p7780_p13 = scmp.lt.s32.totalorder %s210_s10, %s7778_s4 }
  0x39   : > { %p7776_p12 = pneg %p7775_p11  ;;  %p7781_p7 = scmp.lt.s32.totalorder %s7779_s29, %s7772_s26 }
  0x3b   : > { %p7782_p6 = por %p7781_p7, %p7780_p13 }
  0x3d   : > { %p7783_p3 = pnand %p7782_p6, %p7776_p12 }
  0x3f   : > { %7786 = shalt.err (!%p7783_p3)
}
  0x40   : > { %s8619_s28 = smov 64   ;;  %221 = sbr.rel (%p7955_p8) target bundleno = 572 (0x23c), region = 32 }
  0x41   : > { %7504 = dma.hbm_to_vmem [thread:$0]  (!%p8014_p10), %s208_s8, 16384, %s210_s10, %s198_s11, %s8619_s28, %s8619_s28, %s7876_s5  }
  0x42   : > { %s8028_s27 = sand.u32 (!%p7955_p8), 1, %s7855_s13  }
  0x43   : > { %s5631_s4 = sshll.u32 (!%p7955_p8), %s8028_s27, 10  ;;  %s224_s6 = scalar_lea.sflag (!%p7955_p8), [#allocation4], %s8028_s27 }
  0x44   : > { %s8034_s7 = scalar_lea.vmem (!%p7955_p8), [#allocation3], %s5631_s4 }
  0x45   : > { %7838 = dma.done.wait (%p7945_p4), %s224_s6, 16384  }
  0x46   : > { %7840 = vsyncadd (%p7945_p4), %s224_s6, 4294950912 }
  0x47   : > { %7842 = dma.done.wait (%p7935_p1), [#allocation7], 1040  }
  0x48   : > { %7844 = vsyncadd (%p7935_p1), [#allocation7], 4294966256  ;;  %v7569_v0 = vld [vmem:[#allocation6 + $0x38] sm:$0xff]   ;;  %v7570_v1 = vld [vmem:[#allocation6 + $0x30] sm:$0xff]   ;;  %s8164_s20 = scalar_lea.vmem [#allocation9], %s5631_s4  ;;  %s6290_s22 = sshll.u32 %s7863_s15, 14 }
  0x49   : > { %7194 = vmatprep.subr.bf16.mxu0 %v7569_v0  ;;  %7466 = vmatprep.subr.bf16.mxu1 %v7569_v0  ;;  %v7571_v2 = vld [vmem:[#allocation6 + $0x28] sm:$0xff]   ;;  %v7572_v3 = vld [vmem:[#allocation6 + $0x20] sm:$0xff]   ;;  %v7573_v6 = vld [vmem:[#allocation6 + $0x18] sm:$0xff]   ;;  %s5508_s24 = sshll.u32 %s8164_s20, 4  ;;  %s8553_s9 = scalar_lea.hbm %s8609_s3, %s6290_s22  ;;  %s8555_s24 = int_to_ptr.vmem [resolvable:$true] %s5508_s24 }
  0x4a   : > { %7195 = vmatpush3.bf16.msra.mxu0 %v7569_v0  ;;  %7474 = vmatpush3.bf16.msra.mxu1 %v7569_v0  ;;  %v7577_v4 = vld [vmem:[%s8034_s7] sm:$0xff]   ;;  %v7574_v7 = vld [vmem:[#allocation6 + $0x10] sm:$0xff]   ;;  %v7575_v8 = vld [vmem:[#allocation6 + $0x8] sm:$0xff]   ;;  %s5494_s15 = scalar_lea.sflag [#allocation5], %s8028_s27  ;;  %s7787_s10 = scalar_lea.vmem %s8555_s24, 16384 }
  0x4b   : > { %7196 = vmatprep.subr.bf16.mxu0 %v7570_v1  ;;  %7467 = vmatprep.subr.bf16.mxu1 %v7570_v1  ;;  %v7578_v5 = vld [vmem:[%s8034_s7 + $0x200] sm:$0xff]   ;;  %v7579_v10 = vld [vmem:[%s8034_s7 + $0x8] sm:$0xff]   ;;  %v7581_v12 = vld [vmem:[%s8034_s7 + $0x10] sm:$0xff]   ;;  %p7788_p1 = scmp.ne.s32.totalorder %s8555_s24, %s7787_s10  ;;  %s7878_s21 = smov [#allocation9]  }
  0x4c   : > { %7210 = vmatprep.mubr.bf16.mxu0 %v7577_v4  ;;  %7338 = vmatprep.mubr.bf16.mxu1 %v7578_v5  ;;  %v7576_v9 = vld [vmem:[#allocation6] sm:$0xff]   ;;  %v7580_v11 = vld [vmem:[%s8034_s7 + $0x208] sm:$0xff]   ;;  %v7582_v13 = vld [vmem:[%s8034_s7 + $0x210] sm:$0xff]   ;;  %s7791_s11 = sshll.u32 %s7878_s21, 4  ;;  %s7792_s11 = int_to_ptr.vmem [resolvable:$false] %s7791_s11 }
  0x4d   : > { %v7583_v14 = vld [vmem:[%s8034_s7 + $0x18] sm:$0xff]   ;;  %v7585_v16 = vld [vmem:[%s8034_s7 + $0x20] sm:$0xff]   ;;  %v7587_v18 = vld [vmem:[%s8034_s7 + $0x28] sm:$0xff]   ;;  %p7789_p4 = pnand %p7788_p1, %p7998_p5  ;;  %s7793_s26 = scalar_lea.vmem %s7792_s11, 32768 }
  0x4e   : > { %7197 = vmatpush3.bf16.msra.mxu0 %v7570_v1  ;;  %7475 = vmatpush3.bf16.msra.mxu1 %v7570_v1  ;;  %v7584_v15 = vld [vmem:[%s8034_s7 + $0x218] sm:$0xff]   ;;  %v7586_v17 = vld [vmem:[%s8034_s7 + $0x220] sm:$0xff]   ;;  %v7588_v19 = vld [vmem:[%s8034_s7 + $0x228] sm:$0xff]   ;;  %p7794_p8 = scmp.lt.s32.totalorder %s8555_s24, %s7792_s11  ;;  %p7795_p0 = scmp.lt.s32.totalorder %s7793_s26, %s7787_s10 }
  0x4f   : > { %7198 = vmatprep.subr.bf16.mxu0 %v7571_v2  ;;  %7468 = vmatprep.subr.bf16.mxu1 %v7571_v2  ;;  %v7589_v20 = vld [vmem:[%s8034_s7 + $0x30] sm:$0xff]   ;;  %v7591_v22 = vld [vmem:[%s8034_s7 + $0x38] sm:$0xff]   ;;  %v7593_v24 = vld [vmem:[%s8034_s7 + $0x40] sm:$0xff]   ;;  %p7790_p6 = pneg %p7789_p4 }
  0x50   : > { %v7590_v21 = vld [vmem:[%s8034_s7 + $0x230] sm:$0xff]   ;;  %v7592_v23 = vld [vmem:[%s8034_s7 + $0x238] sm:$0xff]   ;;  %v7594_v25 = vld [vmem:[%s8034_s7 + $0x240] sm:$0xff]   ;;  %p7796_p10 = por %p7795_p0, %p7794_p8 }
  0x51   : > { %v7595_v26 = vld [vmem:[%s8034_s7 + $0x48] sm:$0xff]   ;;  %v7597_v28 = vld [vmem:[%s8034_s7 + $0x50] sm:$0xff]   ;;  %v7599_v30 = vld [vmem:[%s8034_s7 + $0x58] sm:$0xff]  }
  0x52   : > { %7199 = vmatpush3.bf16.msra.mxu0 %v7571_v2  ;;  %7476 = vmatpush3.bf16.msra.mxu1 %v7571_v2  ;;  %v7596_v27 = vld [vmem:[%s8034_s7 + $0x248] sm:$0xff]   ;;  %v7598_v29 = vld [vmem:[%s8034_s7 + $0x250] sm:$0xff]   ;;  %v7600_v31 = vld [vmem:[%s8034_s7 + $0x258] sm:$0xff]   ;;  %p7797_p2 = pnand %p7796_p10, %p7790_p6 }
  0x53   : > { %7200 = vmatprep.subr.bf16.mxu0 %v7572_v3  ;;  %7469 = vmatprep.subr.bf16.mxu1 %v7572_v3  ;;  %v7601_v32 = vld [vmem:[%s8034_s7 + $0x60] sm:$0xff]   ;;  %v7603_v34 = vld [vmem:[%s8034_s7 + $0x68] sm:$0xff]   ;;  %v7605_v36 = vld [vmem:[%s8034_s7 + $0x70] sm:$0xff]  }
  0x54   : > { %v7602_v33 = vld [vmem:[%s8034_s7 + $0x260] sm:$0xff]   ;;  %v7604_v35 = vld [vmem:[%s8034_s7 + $0x268] sm:$0xff]   ;;  %v7606_v37 = vld [vmem:[%s8034_s7 + $0x270] sm:$0xff]  }
  0x55   : > { %v7607_v38 = vld [vmem:[%s8034_s7 + $0x78] sm:$0xff]   ;;  %v7609_v40 = vld [vmem:[%s8034_s7 + $0x80] sm:$0xff]   ;;  %v7611_v42 = vld [vmem:[%s8034_s7 + $0x88] sm:$0xff]  }
  0x56   : > { %7201 = vmatpush3.bf16.msra.mxu0 %v7572_v3  ;;  %7477 = vmatpush3.bf16.msra.mxu1 %v7572_v3  ;;  %v7608_v39 = vld [vmem:[%s8034_s7 + $0x278] sm:$0xff]   ;;  %v7610_v41 = vld [vmem:[%s8034_s7 + $0x280] sm:$0xff]   ;;  %v7612_v43 = vld [vmem:[%s8034_s7 + $0x288] sm:$0xff]  }
  0x57   : > { %7202 = vmatprep.subr.bf16.mxu0 %v7573_v6  ;;  %7470 = vmatprep.subr.bf16.mxu1 %v7573_v6  ;;  %v7613_v44 = vld [vmem:[%s8034_s7 + $0x90] sm:$0xff]   ;;  %v7615_v46 = vld [vmem:[%s8034_s7 + $0x98] sm:$0xff]   ;;  %v7617_v48 = vld [vmem:[%s8034_s7 + $0xa0] sm:$0xff]  }
  0x58   : > { %v7614_v45 = vld [vmem:[%s8034_s7 + $0x290] sm:$0xff]   ;;  %v7616_v47 = vld [vmem:[%s8034_s7 + $0x298] sm:$0xff]   ;;  %v7618_v49 = vld [vmem:[%s8034_s7 + $0x2a0] sm:$0xff]  }
  0x59   : > { %v7619_v50 = vld [vmem:[%s8034_s7 + $0xa8] sm:$0xff]   ;;  %v7621_v52 = vld [vmem:[%s8034_s7 + $0xb0] sm:$0xff]   ;;  %v7623_v54 = vld [vmem:[%s8034_s7 + $0xb8] sm:$0xff]  }
  0x5a   : > { %7203 = vmatpush3.bf16.msra.mxu0 %v7573_v6  ;;  %7478 = vmatpush3.bf16.msra.mxu1 %v7573_v6  ;;  %v7620_v51 = vld [vmem:[%s8034_s7 + $0x2a8] sm:$0xff]   ;;  %v7622_v53 = vld [vmem:[%s8034_s7 + $0x2b0] sm:$0xff]   ;;  %v7624_v55 = vld [vmem:[%s8034_s7 + $0x2b8] sm:$0xff]  }
  0x5b   : > { %7204 = vmatprep.subr.bf16.mxu0 %v7574_v7  ;;  %7471 = vmatprep.subr.bf16.mxu1 %v7574_v7  ;;  %v7625_v56 = vld [vmem:[%s8034_s7 + $0xc0] sm:$0xff]   ;;  %v7627_v58 = vld [vmem:[%s8034_s7 + $0xc8] sm:$0xff]   ;;  %v7629_v60 = vld [vmem:[%s8034_s7 + $0xd0] sm:$0xff]  }
  0x5c   : > { %v7626_v57 = vld [vmem:[%s8034_s7 + $0x2c0] sm:$0xff]   ;;  %v7628_v59 = vld [vmem:[%s8034_s7 + $0x2c8] sm:$0xff]   ;;  %v7630_v61 = vld [vmem:[%s8034_s7 + $0x2d0] sm:$0xff]  }
  0x5d   : > { %v7631_v62 = vld [vmem:[%s8034_s7 + $0xd8] sm:$0xff]   ;;  %v7633_v0 = vld [vmem:[%s8034_s7 + $0xe0] sm:$0xff]   ;;  %v7635_v2 = vld [vmem:[%s8034_s7 + $0xe8] sm:$0xff]  }
  0x5e   : > { %7205 = vmatpush3.bf16.msra.mxu0 %v7574_v7  ;;  %7479 = vmatpush3.bf16.msra.mxu1 %v7574_v7  ;;  %v7632_v63 = vld [vmem:[%s8034_s7 + $0x2d8] sm:$0xff]   ;;  %v7634_v1 = vld [vmem:[%s8034_s7 + $0x2e0] sm:$0xff]   ;;  %v7636_v3 = vld [vmem:[%s8034_s7 + $0x2e8] sm:$0xff]  }
  0x5f   : > { %7206 = vmatprep.subr.bf16.mxu0 %v7575_v8  ;;  %7472 = vmatprep.subr.bf16.mxu1 %v7575_v8  ;;  %v7637_v4 = vld [vmem:[%s8034_s7 + $0xf0] sm:$0xff]   ;;  %v7639_v6 = vld [vmem:[%s8034_s7 + $0xf8] sm:$0xff]  }
  0x60   : > { %v7638_v5 = vld [vmem:[%s8034_s7 + $0x2f0] sm:$0xff]   ;;  %v7640_v7 = vld [vmem:[%s8034_s7 + $0x2f8] sm:$0xff]  }
  0x62   : > { %7207 = vmatpush3.bf16.msra.mxu0 %v7575_v8  ;;  %7480 = vmatpush3.bf16.msra.mxu1 %v7575_v8  ;;  %v7641_v8 = vld [vmem:[%s8034_s7 + $0x100] sm:$0xff]  }
  0x63   : > { %7208 = vmatprep.subr.bf16.mxu0 %v7576_v9  ;;  %7473 = vmatprep.subr.bf16.mxu1 %v7576_v9 }
  0x66   : > { %7209 = vmatpush3.bf16.msra.mxu0 %v7576_v9  ;;  %7481 = vmatpush3.bf16.msra.mxu1 %v7576_v9  ;;  %v7642_v9 = vld [vmem:[%s8034_s7 + $0x300] sm:$0xff]  }
  0x69   : > { %7211 = vmatmul.mubr.bf16.vlgmr.msra.gmra.mxu0 %v7579_v10  ;;  %7339 = vmatmul.mubr.bf16.vlgmr.msra.gmra.mxu1 %v7580_v11  ;;  %v7643_v10 = vld [vmem:[%s8034_s7 + $0x108] sm:$0xff]  }
  0x6a   : > { %7214 = vmatprep.mubr.bf16.mxu0 %v7581_v12  ;;  %7342 = vmatprep.mubr.bf16.mxu1 %v7582_v13  ;;  %v7644_v11 = vld [vmem:[%s8034_s7 + $0x308] sm:$0xff]   ;;  %v7645_v12 = vld [vmem:[%s8034_s7 + $0x110] sm:$0xff]  }
  0x6b   : > { %v7646_v13 = vld [vmem:[%s8034_s7 + $0x310] sm:$0xff]  }
  0x71   : > { %7215 = vmatmul.mubr.bf16.gmra.mxu0 %v7583_v14  ;;  %7343 = vmatmul.mubr.bf16.gmra.mxu1 %v7584_v15  ;;  %v7647_v14 = vld [vmem:[%s8034_s7 + $0x118] sm:$0xff]  }
  0x72   : > { %7218 = vmatprep.mubr.bf16.mxu0 %v7585_v16  ;;  %7346 = vmatprep.mubr.bf16.mxu1 %v7586_v17  ;;  %v7648_v15 = vld [vmem:[%s8034_s7 + $0x318] sm:$0xff]   ;;  %v7649_v16 = vld [vmem:[%s8034_s7 + $0x120] sm:$0xff]  }
  0x73   : > { %v7650_v17 = vld [vmem:[%s8034_s7 + $0x320] sm:$0xff]  }
  0x79   : > { %7219 = vmatmul.mubr.bf16.gmra.mxu0 %v7587_v18  ;;  %7347 = vmatmul.mubr.bf16.gmra.mxu1 %v7588_v19  ;;  %v7651_v18 = vld [vmem:[%s8034_s7 + $0x128] sm:$0xff]  }
  0x7a   : > { %7222 = vmatprep.mubr.bf16.mxu0 %v7589_v20  ;;  %7350 = vmatprep.mubr.bf16.mxu1 %v7590_v21  ;;  %v7652_v19 = vld [vmem:[%s8034_s7 + $0x328] sm:$0xff]   ;;  %v7653_v20 = vld [vmem:[%s8034_s7 + $0x130] sm:$0xff]  }
  0x7b   : > { %v7654_v21 = vld [vmem:[%s8034_s7 + $0x330] sm:$0xff]  }
  0x81   : > { %7223 = vmatmul.mubr.bf16.gmra.mxu0 %v7591_v22  ;;  %7351 = vmatmul.mubr.bf16.gmra.mxu1 %v7592_v23  ;;  %v7655_v22 = vld [vmem:[%s8034_s7 + $0x138] sm:$0xff]  }
  0x82   : > { %7226 = vmatprep.mubr.bf16.mxu0 %v7593_v24  ;;  %7354 = vmatprep.mubr.bf16.mxu1 %v7594_v25  ;;  %v7656_v23 = vld [vmem:[%s8034_s7 + $0x338] sm:$0xff]   ;;  %v7657_v24 = vld [vmem:[%s8034_s7 + $0x140] sm:$0xff]  }
  0x83   : > { %v7658_v25 = vld [vmem:[%s8034_s7 + $0x340] sm:$0xff]  }
  0x89   : > { %7227 = vmatmul.mubr.bf16.gmra.mxu0 %v7595_v26  ;;  %7355 = vmatmul.mubr.bf16.gmra.mxu1 %v7596_v27  ;;  %v7659_v26 = vld [vmem:[%s8034_s7 + $0x148] sm:$0xff]  }
  0x8a   : > { %7230 = vmatprep.mubr.bf16.mxu0 %v7597_v28  ;;  %7358 = vmatprep.mubr.bf16.mxu1 %v7598_v29  ;;  %v7660_v27 = vld [vmem:[%s8034_s7 + $0x348] sm:$0xff]   ;;  %v7661_v28 = vld [vmem:[%s8034_s7 + $0x150] sm:$0xff]  }
  0x8b   : > { %v7662_v29 = vld [vmem:[%s8034_s7 + $0x350] sm:$0xff]  }
  0x91   : > { %7231 = vmatmul.mubr.bf16.gmra.mxu0 %v7599_v30  ;;  %7359 = vmatmul.mubr.bf16.gmra.mxu1 %v7600_v31  ;;  %v7663_v30 = vld [vmem:[%s8034_s7 + $0x158] sm:$0xff]  }
  0x92   : > { %7234 = vmatprep.mubr.bf16.mxu0 %v7601_v32  ;;  %7362 = vmatprep.mubr.bf16.mxu1 %v7602_v33  ;;  %v7664_v31 = vld [vmem:[%s8034_s7 + $0x358] sm:$0xff]   ;;  %v7665_v32 = vld [vmem:[%s8034_s7 + $0x160] sm:$0xff]  }
  0x93   : > { %v7666_v33 = vld [vmem:[%s8034_s7 + $0x360] sm:$0xff]  }
  0x99   : > { %7235 = vmatmul.mubr.bf16.gmra.mxu0 %v7603_v34  ;;  %7363 = vmatmul.mubr.bf16.gmra.mxu1 %v7604_v35  ;;  %v7667_v34 = vld [vmem:[%s8034_s7 + $0x168] sm:$0xff]  }
  0x9a   : > { %7238 = vmatprep.mubr.bf16.mxu0 %v7605_v36  ;;  %7366 = vmatprep.mubr.bf16.mxu1 %v7606_v37  ;;  %v7668_v35 = vld [vmem:[%s8034_s7 + $0x368] sm:$0xff]   ;;  %v7669_v36 = vld [vmem:[%s8034_s7 + $0x170] sm:$0xff]  }
  0x9b   : > { %v7670_v37 = vld [vmem:[%s8034_s7 + $0x370] sm:$0xff]  }
  0xa1   : > { %7239 = vmatmul.mubr.bf16.gmra.mxu0 %v7607_v38  ;;  %7367 = vmatmul.mubr.bf16.gmra.mxu1 %v7608_v39  ;;  %v7671_v38 = vld [vmem:[%s8034_s7 + $0x178] sm:$0xff]  }
  0xa2   : > { %7242 = vmatprep.mubr.bf16.mxu0 %v7609_v40  ;;  %7370 = vmatprep.mubr.bf16.mxu1 %v7610_v41  ;;  %v7672_v39 = vld [vmem:[%s8034_s7 + $0x378] sm:$0xff]   ;;  %v7673_v40 = vld [vmem:[%s8034_s7 + $0x180] sm:$0xff]  }
  0xa3   : > { %v7674_v41 = vld [vmem:[%s8034_s7 + $0x380] sm:$0xff]  }
  0xa9   : > { %7243 = vmatmul.mubr.bf16.gmra.mxu0 %v7611_v42  ;;  %7371 = vmatmul.mubr.bf16.gmra.mxu1 %v7612_v43  ;;  %v7675_v42 = vld [vmem:[%s8034_s7 + $0x188] sm:$0xff]  }
  0xaa   : > { %7246 = vmatprep.mubr.bf16.mxu0 %v7613_v44  ;;  %7374 = vmatprep.mubr.bf16.mxu1 %v7614_v45  ;;  %v7676_v43 = vld [vmem:[%s8034_s7 + $0x388] sm:$0xff]   ;;  %v7677_v44 = vld [vmem:[%s8034_s7 + $0x190] sm:$0xff]  }
  0xab   : > { %v7678_v45 = vld [vmem:[%s8034_s7 + $0x390] sm:$0xff]  }
  0xb1   : > { %7247 = vmatmul.mubr.bf16.gmra.mxu0 %v7615_v46  ;;  %7375 = vmatmul.mubr.bf16.gmra.mxu1 %v7616_v47  ;;  %v8146_v46 = vld [vmem:[#allocation8] ss:$0 sm:$0xff] }
  0xb2   : > { %7250 = vmatprep.mubr.bf16.mxu0 %v7617_v48  ;;  %7378 = vmatprep.mubr.bf16.mxu1 %v7618_v49 }
  0xb9   : > { %7251 = vmatmul.mubr.bf16.gmra.mxu0 %v7619_v50  ;;  %7379 = vmatmul.mubr.bf16.gmra.mxu1 %v7620_v51 }
  0xba   : > { %7254 = vmatprep.mubr.bf16.mxu0 %v7621_v52  ;;  %7382 = vmatprep.mubr.bf16.mxu1 %v7622_v53 }
  0xc1   : > { %7255 = vmatmul.mubr.bf16.gmra.mxu0 %v7623_v54  ;;  %7383 = vmatmul.mubr.bf16.gmra.mxu1 %v7624_v55 }
  0xc2   : > { %7258 = vmatprep.mubr.bf16.mxu0 %v7625_v56  ;;  %7386 = vmatprep.mubr.bf16.mxu1 %v7626_v57  ;;  %v7679_v57 = vld [vmem:[%s8034_s7 + $0x198] sm:$0xff]  }
  0xc9   : > { %7259 = vmatmul.mubr.bf16.gmra.mxu0 %v7627_v58  ;;  %7387 = vmatmul.mubr.bf16.gmra.mxu1 %v7628_v59  ;;  %v7680_v58 = vld [vmem:[%s8034_s7 + $0x398] sm:$0xff]  }
  0xca   : > { %7262 = vmatprep.mubr.bf16.mxu0 %v7629_v60  ;;  %7390 = vmatprep.mubr.bf16.mxu1 %v7630_v61  ;;  %v7681_v61 = vld [vmem:[%s8034_s7 + $0x1a0] sm:$0xff]  }
  0xd1   : > { %7263 = vmatmul.mubr.bf16.gmra.mxu0 %v7631_v62  ;;  %7391 = vmatmul.mubr.bf16.gmra.mxu1 %v7632_v63  ;;  %v7682_v62 = vld [vmem:[%s8034_s7 + $0x3a0] sm:$0xff]  }
  0xd2   : > { %7266 = vmatprep.mubr.bf16.mxu0 %v7633_v0  ;;  %7394 = vmatprep.mubr.bf16.mxu1 %v7634_v1 }
  0xd9   : > { %7267 = vmatmul.mubr.bf16.gmra.mxu0 %v7635_v2  ;;  %7395 = vmatmul.mubr.bf16.gmra.mxu1 %v7636_v3 }
  0xda   : > { %7270 = vmatprep.mubr.bf16.mxu0 %v7637_v4  ;;  %7398 = vmatprep.mubr.bf16.mxu1 %v7638_v5 }
  0xe1   : > { %7271 = vmatmul.mubr.bf16.gmra.mxu0 %v7639_v6  ;;  %7399 = vmatmul.mubr.bf16.gmra.mxu1 %v7640_v7 }
  0xe2   : > { %7274 = vmatprep.mubr.bf16.mxu0 %v7641_v8  ;;  %7402 = vmatprep.mubr.bf16.mxu1 %v7642_v9 }
  0xe9   : > { %7275 = vmatmul.mubr.bf16.gmra.mxu0 %v7643_v10  ;;  %7403 = vmatmul.mubr.bf16.gmra.mxu1 %v7644_v11 }
  0xea   : > { %7278 = vmatprep.mubr.bf16.mxu0 %v7645_v12  ;;  %7406 = vmatprep.mubr.bf16.mxu1 %v7646_v13 }
  0xf1   : > { %7279 = vmatmul.mubr.bf16.gmra.mxu0 %v7647_v14  ;;  %7407 = vmatmul.mubr.bf16.gmra.mxu1 %v7648_v15 }
  0xf2   : > { %7282 = vmatprep.mubr.bf16.mxu0 %v7649_v16  ;;  %7410 = vmatprep.mubr.bf16.mxu1 %v7650_v17 }
  0xf9   : > { %7283 = vmatmul.mubr.bf16.gmra.mxu0 %v7651_v18  ;;  %7411 = vmatmul.mubr.bf16.gmra.mxu1 %v7652_v19 }
  0xfa   : > { %7286 = vmatprep.mubr.bf16.mxu0 %v7653_v20  ;;  %7414 = vmatprep.mubr.bf16.mxu1 %v7654_v21 }
 0x101   : > { %7287 = vmatmul.mubr.bf16.gmra.mxu0 %v7655_v22  ;;  %7415 = vmatmul.mubr.bf16.gmra.mxu1 %v7656_v23 }
 0x102   : > { %7290 = vmatprep.mubr.bf16.mxu0 %v7657_v24  ;;  %7418 = vmatprep.mubr.bf16.mxu1 %v7658_v25  ;;  %v7683_v25 = vld [vmem:[%s8034_s7 + $0x1a8] sm:$0xff]  }
 0x109   : > { %7291 = vmatmul.mubr.bf16.gmra.mxu0 %v7659_v26  ;;  %7419 = vmatmul.mubr.bf16.gmra.mxu1 %v7660_v27  ;;  %v7684_v26 = vld [vmem:[%s8034_s7 + $0x3a8] sm:$0xff]  }
 0x10a   : > { %7294 = vmatprep.mubr.bf16.mxu0 %v7661_v28  ;;  %7422 = vmatprep.mubr.bf16.mxu1 %v7662_v29  ;;  %v7685_v29 = vld [vmem:[%s8034_s7 + $0x1b0] sm:$0xff]  }
 0x111   : > { %7295 = vmatmul.mubr.bf16.gmra.mxu0 %v7663_v30  ;;  %7423 = vmatmul.mubr.bf16.gmra.mxu1 %v7664_v31  ;;  %v7686_v30 = vld [vmem:[%s8034_s7 + $0x3b0] sm:$0xff]  }
 0x112   : > { %7298 = vmatprep.mubr.bf16.mxu0 %v7665_v32  ;;  %7426 = vmatprep.mubr.bf16.mxu1 %v7666_v33 }
 0x119   : > { %7299 = vmatmul.mubr.bf16.gmra.mxu0 %v7667_v34  ;;  %7427 = vmatmul.mubr.bf16.gmra.mxu1 %v7668_v35 }
 0x11a   : > { %7302 = vmatprep.mubr.bf16.mxu0 %v7669_v36  ;;  %7430 = vmatprep.mubr.bf16.mxu1 %v7670_v37 }
 0x121   : > { %7303 = vmatmul.mubr.bf16.gmra.mxu0 %v7671_v38  ;;  %7431 = vmatmul.mubr.bf16.gmra.mxu1 %v7672_v39 }
 0x122   : > { %7306 = vmatprep.mubr.bf16.mxu0 %v7673_v40  ;;  %7434 = vmatprep.mubr.bf16.mxu1 %v7674_v41 }
 0x129   : > { %v7212_v47 = vpop.f32.mrf.mxu0  ;;  %7307 = vmatmul.mubr.bf16.gmra.mxu0 %v7675_v42  ;;  %v7340_v48 = vpop.f32.mrf.mxu1  ;;  %7435 = vmatmul.mubr.bf16.gmra.mxu1 %v7676_v43 }
 0x12a   : > { %7310 = vmatprep.mubr.bf16.mxu0 %v7677_v44  ;;  %7438 = vmatprep.mubr.bf16.mxu1 %v7678_v45  ;;  %v3703_v49 = vadd.f32 %v7212_v47, %v8146_v46  ;;  %v3831_v50 = vadd.f32 %v7340_v48, %v8146_v46 }
 0x12b   : > { %v1900_v51 = vpop.f32.mrf.mxu0  ;;  %v2412_v52 = vpop.f32.mrf.mxu1 }
 0x12c   : > { %v3701_v53 = vadd.f32 %v8146_v46, %v1900_v51  ;;  %v3829_v54 = vadd.f32 %v8146_v46, %v2412_v52  ;;  %v3959_v63 = vmax.f32 %v3703_v49, 0.0  ;;  %v4087_v0 = vmax.f32 %v3831_v50, 0.0 }
 0x12d   : > { %v7213_v55 = vpop.f32.mrf.mxu0  ;;  %v7341_v56 = vpop.f32.mrf.mxu1 }
 0x12e   : > { %v3704_v59 = vadd.f32 %v7213_v55, %v8146_v46  ;;  %v3832_v60 = vadd.f32 %v7341_v56, %v8146_v46  ;;  %v3957_v7 = vmax.f32 %v3701_v53, 0.0  ;;  %v4085_v8 = vmax.f32 %v3829_v54, 0.0 }
 0x12f   : > { %v1903_v1 = vpop.f32.mrf.mxu0  ;;  %v2415_v2 = vpop.f32.mrf.mxu1 }
 0x130   : > { %v3960_v3 = vmax.f32 %v3704_v59, 0.0  ;;  %v4088_v4 = vmax.f32 %v3832_v60, 0.0  ;;  %v3702_v5 = vadd.f32 %v8146_v46, %v1903_v1  ;;  %v3830_v6 = vadd.f32 %v8146_v46, %v2415_v2  ;;  %v7688_v59 = vld [vmem:[%s8034_s7 + $0x3b8] sm:$0xff]  }
 0x131   : > { %v7216_v9 = vpop.f32.mrf.mxu0  ;;  %7311 = vmatmul.mubr.bf16.gmra.mxu0 %v7679_v57  ;;  %v7344_v10 = vpop.f32.mrf.mxu1  ;;  %7439 = vmatmul.mubr.bf16.gmra.mxu1 %v7680_v58  ;;  %v7687_v58 = vld [vmem:[%s8034_s7 + $0x1b8] sm:$0xff]  }
 0x132   : > { %v6299_v11 = vpack.c.bf16 %v3960_v3, %v3959_v63  ;;  %v6619_v12 = vpack.c.bf16 %v4088_v4, %v4087_v0  ;;  %v3958_v13 = vmax.f32 %v3702_v5, 0.0  ;;  %v4086_v14 = vmax.f32 %v3830_v6, 0.0  ;;  %7314 = vmatprep.mubr.bf16.mxu0 %v7681_v61  ;;  %7442 = vmatprep.mubr.bf16.mxu1 %v7682_v62  ;;  %v7689_v62 = vld [vmem:[%s8034_s7 + $0x1c0] sm:$0xff]  }
 0x133   : > { %v3707_v15 = vadd.f32 %v7216_v9, %v8146_v46  ;;  %v3835_v16 = vadd.f32 %v7344_v10, %v8146_v46  ;;  %v1916_v17 = vpop.f32.mrf.mxu0  ;;  %v2428_v18 = vpop.f32.mrf.mxu1  ;;  %v7690_v63 = vld [vmem:[%s8034_s7 + $0x3c0] sm:$0xff]  }
 0x134   : > { %6931 = vst [vmem:[%s8164_s20 + $0x8] sm:$0xff] %v6299_v11   ;;  %6995 = vst [vmem:[%s8164_s20 + $0x208] sm:$0xff] %v6619_v12   ;;  %v6294_v19 = vpack.c.bf16 %v3958_v13, %v3957_v7  ;;  %v6614_v20 = vpack.c.bf16 %v4086_v14, %v4085_v8  ;;  %v3705_v21 = vadd.f32 %v8146_v46, %v1916_v17 }
 0x135   : > { %v3833_v22 = vadd.f32 %v8146_v46, %v2428_v18  ;;  %v7217_v23 = vpop.f32.mrf.mxu0  ;;  %v7345_v24 = vpop.f32.mrf.mxu1  ;;  %v3963_v31 = vmax.f32 %v3707_v15, 0.0  ;;  %v4091_v32 = vmax.f32 %v3835_v16, 0.0 }
 0x136   : > { %6295 = vst [vmem:[%s8164_s20] sm:$0xff] %v6294_v19   ;;  %6994 = vst [vmem:[%s8164_s20 + $0x200] sm:$0xff] %v6614_v20   ;;  %v3708_v27 = vadd.f32 %v7217_v23, %v8146_v46  ;;  %v3836_v28 = vadd.f32 %v7345_v24, %v8146_v46  ;;  %v3961_v39 = vmax.f32 %v3705_v21, 0.0 }
 0x137   : > { %v1919_v33 = vpop.f32.mrf.mxu0  ;;  %v2431_v34 = vpop.f32.mrf.mxu1  ;;  %v4089_v40 = vmax.f32 %v3833_v22, 0.0 }
 0x138   : > { %v3964_v35 = vmax.f32 %v3708_v27, 0.0  ;;  %v4092_v36 = vmax.f32 %v3836_v28, 0.0  ;;  %v3706_v37 = vadd.f32 %v8146_v46, %v1919_v33  ;;  %v3834_v38 = vadd.f32 %v8146_v46, %v2431_v34  ;;  %v7692_v27 = vld [vmem:[%s8034_s7 + $0x3c8] sm:$0xff]  }
 0x139   : > { %v7220_v41 = vpop.f32.mrf.mxu0  ;;  %7315 = vmatmul.mubr.bf16.gmra.mxu0 %v7683_v25  ;;  %v7348_v42 = vpop.f32.mrf.mxu1  ;;  %7443 = vmatmul.mubr.bf16.gmra.mxu1 %v7684_v26  ;;  %v7691_v26 = vld [vmem:[%s8034_s7 + $0x1c8] sm:$0xff]  }
 0x13a   : > { %v6309_v43 = vpack.c.bf16 %v3964_v35, %v3963_v31  ;;  %v6629_v44 = vpack.c.bf16 %v4092_v36, %v4091_v32  ;;  %v3962_v45 = vmax.f32 %v3706_v37, 0.0  ;;  %v4090_v47 = vmax.f32 %v3834_v38, 0.0  ;;  %7318 = vmatprep.mubr.bf16.mxu0 %v7685_v29  ;;  %7446 = vmatprep.mubr.bf16.mxu1 %v7686_v30  ;;  %v7693_v30 = vld [vmem:[%s8034_s7 + $0x1d0] sm:$0xff]  }
 0x13b   : > { %v3711_v48 = vadd.f32 %v7220_v41, %v8146_v46  ;;  %v3839_v49 = vadd.f32 %v7348_v42, %v8146_v46  ;;  %v1932_v50 = vpop.f32.mrf.mxu0  ;;  %v2444_v51 = vpop.f32.mrf.mxu1  ;;  %v7694_v31 = vld [vmem:[%s8034_s7 + $0x3d0] sm:$0xff]  }
 0x13c   : > { %6933 = vst [vmem:[%s8164_s20 + $0x18] sm:$0xff] %v6309_v43   ;;  %6997 = vst [vmem:[%s8164_s20 + $0x218] sm:$0xff] %v6629_v44   ;;  %v6304_v52 = vpack.c.bf16 %v3962_v45, %v3961_v39  ;;  %v6624_v53 = vpack.c.bf16 %v4090_v47, %v4089_v40  ;;  %v3709_v54 = vadd.f32 %v8146_v46, %v1932_v50 }
 0x13d   : > { %v3837_v55 = vadd.f32 %v8146_v46, %v2444_v51  ;;  %v7221_v56 = vpop.f32.mrf.mxu0  ;;  %v7349_v57 = vpop.f32.mrf.mxu1  ;;  %v3967_v0 = vmax.f32 %v3711_v48, 0.0  ;;  %v4095_v1 = vmax.f32 %v3839_v49, 0.0 }
 0x13e   : > { %6932 = vst [vmem:[%s8164_s20 + $0x10] sm:$0xff] %v6304_v52   ;;  %6996 = vst [vmem:[%s8164_s20 + $0x210] sm:$0xff] %v6624_v53   ;;  %v3712_v60 = vadd.f32 %v7221_v56, %v8146_v46  ;;  %v3840_v61 = vadd.f32 %v7349_v57, %v8146_v46  ;;  %v3965_v8 = vmax.f32 %v3709_v54, 0.0 }
 0x13f   : > { %v1935_v2 = vpop.f32.mrf.mxu0  ;;  %v2447_v3 = vpop.f32.mrf.mxu1  ;;  %v4093_v9 = vmax.f32 %v3837_v55, 0.0 }
 0x140   : > { %v3968_v4 = vmax.f32 %v3712_v60, 0.0  ;;  %v4096_v5 = vmax.f32 %v3840_v61, 0.0  ;;  %v3710_v6 = vadd.f32 %v8146_v46, %v1935_v2  ;;  %v3838_v7 = vadd.f32 %v8146_v46, %v2447_v3  ;;  %v7696_v60 = vld [vmem:[%s8034_s7 + $0x3d8] sm:$0xff]  }
 0x141   : > { %v7224_v10 = vpop.f32.mrf.mxu0  ;;  %7319 = vmatmul.mubr.bf16.gmra.mxu0 %v7687_v58  ;;  %v7352_v11 = vpop.f32.mrf.mxu1  ;;  %7447 = vmatmul.mubr.bf16.gmra.mxu1 %v7688_v59  ;;  %v7695_v59 = vld [vmem:[%s8034_s7 + $0x1d8] sm:$0xff]  }
 0x142   : > { %v6319_v12 = vpack.c.bf16 %v3968_v4, %v3967_v0  ;;  %v6639_v13 = vpack.c.bf16 %v4096_v5, %v4095_v1  ;;  %v3966_v14 = vmax.f32 %v3710_v6, 0.0  ;;  %v4094_v15 = vmax.f32 %v3838_v7, 0.0  ;;  %7322 = vmatprep.mubr.bf16.mxu0 %v7689_v62  ;;  %7450 = vmatprep.mubr.bf16.mxu1 %v7690_v63  ;;  %v7697_v63 = vld [vmem:[%s8034_s7 + $0x1e0] sm:$0xff]  }
 0x143   : > { %v3715_v16 = vadd.f32 %v7224_v10, %v8146_v46  ;;  %v3843_v17 = vadd.f32 %v7352_v11, %v8146_v46  ;;  %v1948_v18 = vpop.f32.mrf.mxu0  ;;  %v2460_v19 = vpop.f32.mrf.mxu1  ;;  %v7698_v0 = vld [vmem:[%s8034_s7 + $0x3e0] sm:$0xff]  }
 0x144   : > { %6935 = vst [vmem:[%s8164_s20 + $0x28] sm:$0xff] %v6319_v12   ;;  %6999 = vst [vmem:[%s8164_s20 + $0x228] sm:$0xff] %v6639_v13   ;;  %v6314_v20 = vpack.c.bf16 %v3966_v14, %v3965_v8  ;;  %v6634_v21 = vpack.c.bf16 %v4094_v15, %v4093_v9  ;;  %v3713_v22 = vadd.f32 %v8146_v46, %v1948_v18 }
 0x145   : > { %v3841_v23 = vadd.f32 %v8146_v46, %v2460_v19  ;;  %v7225_v24 = vpop.f32.mrf.mxu0  ;;  %v7353_v25 = vpop.f32.mrf.mxu1  ;;  %v3971_v32 = vmax.f32 %v3715_v16, 0.0  ;;  %v4099_v33 = vmax.f32 %v3843_v17, 0.0 }
 0x146   : > { %6934 = vst [vmem:[%s8164_s20 + $0x20] sm:$0xff] %v6314_v20   ;;  %6998 = vst [vmem:[%s8164_s20 + $0x220] sm:$0xff] %v6634_v21   ;;  %v3716_v28 = vadd.f32 %v7225_v24, %v8146_v46  ;;  %v3844_v29 = vadd.f32 %v7353_v25, %v8146_v46  ;;  %v3969_v40 = vmax.f32 %v3713_v22, 0.0 }
 0x147   : > { %v1951_v34 = vpop.f32.mrf.mxu0  ;;  %v2463_v35 = vpop.f32.mrf.mxu1  ;;  %v4097_v41 = vmax.f32 %v3841_v23, 0.0 }
 0x148   : > { %v3972_v36 = vmax.f32 %v3716_v28, 0.0  ;;  %v4100_v37 = vmax.f32 %v3844_v29, 0.0  ;;  %v3714_v38 = vadd.f32 %v8146_v46, %v1951_v34  ;;  %v3842_v39 = vadd.f32 %v8146_v46, %v2463_v35  ;;  %v7700_v28 = vld [vmem:[%s8034_s7 + $0x3e8] sm:$0xff]  }
 0x149   : > { %v7228_v42 = vpop.f32.mrf.mxu0  ;;  %7323 = vmatmul.mubr.bf16.gmra.mxu0 %v7691_v26  ;;  %v7356_v43 = vpop.f32.mrf.mxu1  ;;  %7451 = vmatmul.mubr.bf16.gmra.mxu1 %v7692_v27  ;;  %v7699_v27 = vld [vmem:[%s8034_s7 + $0x1e8] sm:$0xff]  }
 0x14a   : > { %v6329_v44 = vpack.c.bf16 %v3972_v36, %v3971_v32  ;;  %v6649_v45 = vpack.c.bf16 %v4100_v37, %v4099_v33  ;;  %v3970_v47 = vmax.f32 %v3714_v38, 0.0  ;;  %v4098_v48 = vmax.f32 %v3842_v39, 0.0  ;;  %7326 = vmatprep.mubr.bf16.mxu0 %v7693_v30  ;;  %7454 = vmatprep.mubr.bf16.mxu1 %v7694_v31  ;;  %v7701_v31 = vld [vmem:[%s8034_s7 + $0x1f0] sm:$0xff]  }
 0x14b   : > { %v3719_v49 = vadd.f32 %v7228_v42, %v8146_v46  ;;  %v3847_v50 = vadd.f32 %v7356_v43, %v8146_v46  ;;  %v1964_v51 = vpop.f32.mrf.mxu0  ;;  %v2476_v52 = vpop.f32.mrf.mxu1  ;;  %v7702_v32 = vld [vmem:[%s8034_s7 + $0x3f0] sm:$0xff]  }
 0x14c   : > { %6937 = vst [vmem:[%s8164_s20 + $0x38] sm:$0xff] %v6329_v44   ;;  %7001 = vst [vmem:[%s8164_s20 + $0x238] sm:$0xff] %v6649_v45   ;;  %v6324_v53 = vpack.c.bf16 %v3970_v47, %v3969_v40  ;;  %v6644_v54 = vpack.c.bf16 %v4098_v48, %v4097_v41  ;;  %v3717_v55 = vadd.f32 %v8146_v46, %v1964_v51 }
 0x14d   : > { %v3845_v56 = vadd.f32 %v8146_v46, %v2476_v52  ;;  %v7229_v57 = vpop.f32.mrf.mxu0  ;;  %v7357_v58 = vpop.f32.mrf.mxu1  ;;  %v3975_v1 = vmax.f32 %v3719_v49, 0.0  ;;  %v4103_v2 = vmax.f32 %v3847_v50, 0.0 }
 0x14e   : > { %6936 = vst [vmem:[%s8164_s20 + $0x30] sm:$0xff] %v6324_v53   ;;  %7000 = vst [vmem:[%s8164_s20 + $0x230] sm:$0xff] %v6644_v54   ;;  %v3720_v61 = vadd.f32 %v7229_v57, %v8146_v46  ;;  %v3848_v62 = vadd.f32 %v7357_v58, %v8146_v46  ;;  %v3973_v9 = vmax.f32 %v3717_v55, 0.0 }
 0x14f   : > { %v1967_v3 = vpop.f32.mrf.mxu0  ;;  %v2479_v4 = vpop.f32.mrf.mxu1  ;;  %v4101_v10 = vmax.f32 %v3845_v56, 0.0 }
 0x150   : > { %v3976_v5 = vmax.f32 %v3720_v61, 0.0  ;;  %v4104_v6 = vmax.f32 %v3848_v62, 0.0  ;;  %v3718_v7 = vadd.f32 %v8146_v46, %v1967_v3  ;;  %v3846_v8 = vadd.f32 %v8146_v46, %v2479_v4  ;;  %v7704_v61 = vld [vmem:[%s8034_s7 + $0x3f8] sm:$0xff]  }
 0x151   : > { %v7232_v11 = vpop.f32.mrf.mxu0  ;;  %7327 = vmatmul.mubr.bf16.gmra.mxu0 %v7695_v59  ;;  %v7360_v12 = vpop.f32.mrf.mxu1  ;;  %7455 = vmatmul.mubr.bf16.gmra.mxu1 %v7696_v60  ;;  %v7703_v60 = vld [vmem:[%s8034_s7 + $0x1f8] sm:$0xff]  }
 0x152   : > { %v6339_v13 = vpack.c.bf16 %v3976_v5, %v3975_v1  ;;  %v6659_v14 = vpack.c.bf16 %v4104_v6, %v4103_v2  ;;  %v3974_v15 = vmax.f32 %v3718_v7, 0.0  ;;  %v4102_v16 = vmax.f32 %v3846_v8, 0.0  ;;  %7330 = vmatprep.mubr.bf16.mxu0 %v7697_v63  ;;  %7458 = vmatprep.mubr.bf16.mxu1 %v7698_v0 }
 0x153   : > { %v3723_v17 = vadd.f32 %v7232_v11, %v8146_v46  ;;  %v3851_v18 = vadd.f32 %v7360_v12, %v8146_v46  ;;  %v1980_v19 = vpop.f32.mrf.mxu0  ;;  %v2492_v20 = vpop.f32.mrf.mxu1 }
 0x154   : > { %6939 = vst [vmem:[%s8164_s20 + $0x48] sm:$0xff] %v6339_v13   ;;  %7003 = vst [vmem:[%s8164_s20 + $0x248] sm:$0xff] %v6659_v14   ;;  %v6334_v21 = vpack.c.bf16 %v3974_v15, %v3973_v9  ;;  %v6654_v22 = vpack.c.bf16 %v4102_v16, %v4101_v10  ;;  %v3721_v23 = vadd.f32 %v8146_v46, %v1980_v19 }
 0x155   : > { %v3849_v24 = vadd.f32 %v8146_v46, %v2492_v20  ;;  %v7233_v25 = vpop.f32.mrf.mxu0  ;;  %v7361_v26 = vpop.f32.mrf.mxu1  ;;  %v3979_v33 = vmax.f32 %v3723_v17, 0.0  ;;  %v4107_v34 = vmax.f32 %v3851_v18, 0.0 }
 0x156   : > { %6938 = vst [vmem:[%s8164_s20 + $0x40] sm:$0xff] %v6334_v21   ;;  %7002 = vst [vmem:[%s8164_s20 + $0x240] sm:$0xff] %v6654_v22   ;;  %v3724_v29 = vadd.f32 %v7233_v25, %v8146_v46  ;;  %v3852_v30 = vadd.f32 %v7361_v26, %v8146_v46  ;;  %v3977_v41 = vmax.f32 %v3721_v23, 0.0 }
 0x157   : > { %v1983_v35 = vpop.f32.mrf.mxu0  ;;  %v2495_v36 = vpop.f32.mrf.mxu1  ;;  %v4105_v42 = vmax.f32 %v3849_v24, 0.0 }
 0x158   : > { %v3980_v37 = vmax.f32 %v3724_v29, 0.0  ;;  %v4108_v38 = vmax.f32 %v3852_v30, 0.0  ;;  %v3722_v39 = vadd.f32 %v8146_v46, %v1983_v35  ;;  %v3850_v40 = vadd.f32 %v8146_v46, %v2495_v36 }
 0x159   : > { %v7236_v43 = vpop.f32.mrf.mxu0  ;;  %7331 = vmatmul.mubr.bf16.gmra.mxu0 %v7699_v27  ;;  %v7364_v44 = vpop.f32.mrf.mxu1  ;;  %7459 = vmatmul.mubr.bf16.gmra.mxu1 %v7700_v28 }
 0x15a   : > { %v6349_v45 = vpack.c.bf16 %v3980_v37, %v3979_v33  ;;  %v6669_v47 = vpack.c.bf16 %v4108_v38, %v4107_v34  ;;  %v3978_v48 = vmax.f32 %v3722_v39, 0.0  ;;  %v4106_v49 = vmax.f32 %v3850_v40, 0.0  ;;  %7334 = vmatprep.mubr.bf16.mxu0 %v7701_v31  ;;  %7462 = vmatprep.mubr.bf16.mxu1 %v7702_v32 }
 0x15b   : > { %v3727_v50 = vadd.f32 %v7236_v43, %v8146_v46  ;;  %v3855_v51 = vadd.f32 %v7364_v44, %v8146_v46  ;;  %v1996_v52 = vpop.f32.mrf.mxu0  ;;  %v2508_v53 = vpop.f32.mrf.mxu1 }
 0x15c   : > { %6941 = vst [vmem:[%s8164_s20 + $0x58] sm:$0xff] %v6349_v45   ;;  %7005 = vst [vmem:[%s8164_s20 + $0x258] sm:$0xff] %v6669_v47   ;;  %v6344_v54 = vpack.c.bf16 %v3978_v48, %v3977_v41  ;;  %v6664_v55 = vpack.c.bf16 %v4106_v49, %v4105_v42  ;;  %v3725_v56 = vadd.f32 %v8146_v46, %v1996_v52 }
 0x15d   : > { %v3853_v57 = vadd.f32 %v8146_v46, %v2508_v53  ;;  %v7237_v58 = vpop.f32.mrf.mxu0  ;;  %v7365_v59 = vpop.f32.mrf.mxu1  ;;  %v3983_v0 = vmax.f32 %v3727_v50, 0.0  ;;  %v4111_v1 = vmax.f32 %v3855_v51, 0.0 }
 0x15e   : > { %6940 = vst [vmem:[%s8164_s20 + $0x50] sm:$0xff] %v6344_v54   ;;  %7004 = vst [vmem:[%s8164_s20 + $0x250] sm:$0xff] %v6664_v55   ;;  %v3728_v62 = vadd.f32 %v7237_v58, %v8146_v46  ;;  %v3856_v63 = vadd.f32 %v7365_v59, %v8146_v46  ;;  %v3981_v8 = vmax.f32 %v3725_v56, 0.0 }
 0x15f   : > { %v1999_v2 = vpop.f32.mrf.mxu0  ;;  %v2511_v3 = vpop.f32.mrf.mxu1  ;;  %v4109_v9 = vmax.f32 %v3853_v57, 0.0 }
 0x160   : > { %v3984_v4 = vmax.f32 %v3728_v62, 0.0  ;;  %v4112_v5 = vmax.f32 %v3856_v63, 0.0  ;;  %v3726_v6 = vadd.f32 %v8146_v46, %v1999_v2  ;;  %v3854_v7 = vadd.f32 %v8146_v46, %v2511_v3 }
 0x161   : > { %v7240_v10 = vpop.f32.mrf.mxu0  ;;  %7335 = vmatmul.mubr.bf16.gmra.mxu0 %v7703_v60  ;;  %v7368_v11 = vpop.f32.mrf.mxu1  ;;  %7463 = vmatmul.mubr.bf16.gmra.mxu1 %v7704_v61 }
 0x162   : > { %v6359_v12 = vpack.c.bf16 %v3984_v4, %v3983_v0  ;;  %v6679_v13 = vpack.c.bf16 %v4112_v5, %v4111_v1  ;;  %v3982_v14 = vmax.f32 %v3726_v6, 0.0  ;;  %v4110_v15 = vmax.f32 %v3854_v7, 0.0 }
 0x163   : > { %v3731_v16 = vadd.f32 %v7240_v10, %v8146_v46  ;;  %v3859_v17 = vadd.f32 %v7368_v11, %v8146_v46  ;;  %v2012_v18 = vpop.f32.mrf.mxu0  ;;  %v2524_v19 = vpop.f32.mrf.mxu1 }
 0x164   : > { %6943 = vst [vmem:[%s8164_s20 + $0x68] sm:$0xff] %v6359_v12   ;;  %7007 = vst [vmem:[%s8164_s20 + $0x268] sm:$0xff] %v6679_v13   ;;  %v6354_v20 = vpack.c.bf16 %v3982_v14, %v3981_v8  ;;  %v6674_v21 = vpack.c.bf16 %v4110_v15, %v4109_v9  ;;  %v3729_v22 = vadd.f32 %v8146_v46, %v2012_v18 }
 0x165   : > { %v3857_v23 = vadd.f32 %v8146_v46, %v2524_v19  ;;  %v7241_v24 = vpop.f32.mrf.mxu0  ;;  %v7369_v25 = vpop.f32.mrf.mxu1  ;;  %v3987_v28 = vmax.f32 %v3731_v16, 0.0  ;;  %v4115_v29 = vmax.f32 %v3859_v17, 0.0 }
 0x166   : > { %6942 = vst [vmem:[%s8164_s20 + $0x60] sm:$0xff] %v6354_v20   ;;  %7006 = vst [vmem:[%s8164_s20 + $0x260] sm:$0xff] %v6674_v21   ;;  %v3732_v26 = vadd.f32 %v7241_v24, %v8146_v46  ;;  %v3860_v27 = vadd.f32 %v7369_v25, %v8146_v46  ;;  %v3985_v36 = vmax.f32 %v3729_v22, 0.0 }
 0x167   : > { %v2015_v30 = vpop.f32.mrf.mxu0  ;;  %v2527_v31 = vpop.f32.mrf.mxu1  ;;  %v4113_v37 = vmax.f32 %v3857_v23, 0.0 }
 0x168   : > { %v3988_v32 = vmax.f32 %v3732_v26, 0.0  ;;  %v4116_v33 = vmax.f32 %v3860_v27, 0.0  ;;  %v3730_v34 = vadd.f32 %v8146_v46, %v2015_v30  ;;  %v3858_v35 = vadd.f32 %v8146_v46, %v2527_v31 }
 0x169   : > { %v7244_v38 = vpop.f32.mrf.mxu0  ;;  %v7372_v39 = vpop.f32.mrf.mxu1 }
 0x16a   : > { %v6369_v40 = vpack.c.bf16 %v3988_v32, %v3987_v28  ;;  %v6689_v41 = vpack.c.bf16 %v4116_v33, %v4115_v29  ;;  %v3986_v42 = vmax.f32 %v3730_v34, 0.0  ;;  %v4114_v43 = vmax.f32 %v3858_v35, 0.0 }
 0x16b   : > { %v3735_v44 = vadd.f32 %v7244_v38, %v8146_v46  ;;  %v3863_v45 = vadd.f32 %v7372_v39, %v8146_v46  ;;  %v2028_v47 = vpop.f32.mrf.mxu0  ;;  %v2540_v48 = vpop.f32.mrf.mxu1 }
 0x16c   : > { %6945 = vst [vmem:[%s8164_s20 + $0x78] sm:$0xff] %v6369_v40   ;;  %7009 = vst [vmem:[%s8164_s20 + $0x278] sm:$0xff] %v6689_v41   ;;  %v6364_v49 = vpack.c.bf16 %v3986_v42, %v3985_v36  ;;  %v6684_v50 = vpack.c.bf16 %v4114_v43, %v4113_v37  ;;  %v3733_v51 = vadd.f32 %v8146_v46, %v2028_v47 }
 0x16d   : > { %v3861_v52 = vadd.f32 %v8146_v46, %v2540_v48  ;;  %v7245_v53 = vpop.f32.mrf.mxu0  ;;  %v7373_v54 = vpop.f32.mrf.mxu1  ;;  %v3991_v57 = vmax.f32 %v3735_v44, 0.0  ;;  %v4119_v58 = vmax.f32 %v3863_v45, 0.0 }
 0x16e   : > { %6944 = vst [vmem:[%s8164_s20 + $0x70] sm:$0xff] %v6364_v49   ;;  %7008 = vst [vmem:[%s8164_s20 + $0x270] sm:$0xff] %v6684_v50   ;;  %v3736_v55 = vadd.f32 %v7245_v53, %v8146_v46  ;;  %v3864_v56 = vadd.f32 %v7373_v54, %v8146_v46  ;;  %v3989_v1 = vmax.f32 %v3733_v51, 0.0 }
 0x16f   : > { %v2031_v59 = vpop.f32.mrf.mxu0  ;;  %v2543_v60 = vpop.f32.mrf.mxu1  ;;  %v4117_v2 = vmax.f32 %v3861_v52, 0.0 }
 0x170   : > { %v3992_v61 = vmax.f32 %v3736_v55, 0.0  ;;  %v4120_v62 = vmax.f32 %v3864_v56, 0.0  ;;  %v3734_v63 = vadd.f32 %v8146_v46, %v2031_v59  ;;  %v3862_v0 = vadd.f32 %v8146_v46, %v2543_v60 }
 0x171   : > { %v7248_v3 = vpop.f32.mrf.mxu0  ;;  %v7376_v4 = vpop.f32.mrf.mxu1 }
 0x172   : > { %v6379_v5 = vpack.c.bf16 %v3992_v61, %v3991_v57  ;;  %v6699_v6 = vpack.c.bf16 %v4120_v62, %v4119_v58  ;;  %v3990_v7 = vmax.f32 %v3734_v63, 0.0  ;;  %v4118_v8 = vmax.f32 %v3862_v0, 0.0 }
 0x173   : > { %v3739_v9 = vadd.f32 %v7248_v3, %v8146_v46  ;;  %v3867_v10 = vadd.f32 %v7376_v4, %v8146_v46  ;;  %v2044_v11 = vpop.f32.mrf.mxu0  ;;  %v2556_v12 = vpop.f32.mrf.mxu1 }
 0x174   : > { %6947 = vst [vmem:[%s8164_s20 + $0x88] sm:$0xff] %v6379_v5   ;;  %7011 = vst [vmem:[%s8164_s20 + $0x288] sm:$0xff] %v6699_v6   ;;  %v6374_v13 = vpack.c.bf16 %v3990_v7, %v3989_v1  ;;  %v6694_v14 = vpack.c.bf16 %v4118_v8, %v4117_v2  ;;  %v3737_v15 = vadd.f32 %v8146_v46, %v2044_v11 }
 0x175   : > { %v3865_v16 = vadd.f32 %v8146_v46, %v2556_v12  ;;  %v7249_v17 = vpop.f32.mrf.mxu0  ;;  %v7377_v18 = vpop.f32.mrf.mxu1  ;;  %v3995_v21 = vmax.f32 %v3739_v9, 0.0  ;;  %v4123_v22 = vmax.f32 %v3867_v10, 0.0 }
 0x176   : > { %6946 = vst [vmem:[%s8164_s20 + $0x80] sm:$0xff] %v6374_v13   ;;  %7010 = vst [vmem:[%s8164_s20 + $0x280] sm:$0xff] %v6694_v14   ;;  %v3740_v19 = vadd.f32 %v7249_v17, %v8146_v46  ;;  %v3868_v20 = vadd.f32 %v7377_v18, %v8146_v46  ;;  %v3993_v29 = vmax.f32 %v3737_v15, 0.0 }
 0x177   : > { %v2047_v23 = vpop.f32.mrf.mxu0  ;;  %v2559_v24 = vpop.f32.mrf.mxu1  ;;  %v4121_v30 = vmax.f32 %v3865_v16, 0.0 }
 0x178   : > { %v3996_v25 = vmax.f32 %v3740_v19, 0.0  ;;  %v4124_v26 = vmax.f32 %v3868_v20, 0.0  ;;  %v3738_v27 = vadd.f32 %v8146_v46, %v2047_v23  ;;  %v3866_v28 = vadd.f32 %v8146_v46, %v2559_v24 }
 0x179   : > { %v7252_v31 = vpop.f32.mrf.mxu0  ;;  %v7380_v32 = vpop.f32.mrf.mxu1 }
 0x17a   : > { %v6389_v33 = vpack.c.bf16 %v3996_v25, %v3995_v21  ;;  %v6709_v34 = vpack.c.bf16 %v4124_v26, %v4123_v22  ;;  %v3994_v35 = vmax.f32 %v3738_v27, 0.0  ;;  %v4122_v36 = vmax.f32 %v3866_v28, 0.0 }
 0x17b   : > { %v3743_v37 = vadd.f32 %v7252_v31, %v8146_v46  ;;  %v3871_v38 = vadd.f32 %v7380_v32, %v8146_v46  ;;  %v2060_v39 = vpop.f32.mrf.mxu0  ;;  %v2572_v40 = vpop.f32.mrf.mxu1 }
 0x17c   : > { %6949 = vst [vmem:[%s8164_s20 + $0x98] sm:$0xff] %v6389_v33   ;;  %7013 = vst [vmem:[%s8164_s20 + $0x298] sm:$0xff] %v6709_v34   ;;  %v6384_v41 = vpack.c.bf16 %v3994_v35, %v3993_v29  ;;  %v6704_v42 = vpack.c.bf16 %v4122_v36, %v4121_v30  ;;  %v3741_v43 = vadd.f32 %v8146_v46, %v2060_v39 }
 0x17d   : > { %v3869_v44 = vadd.f32 %v8146_v46, %v2572_v40  ;;  %v7253_v45 = vpop.f32.mrf.mxu0  ;;  %v7381_v47 = vpop.f32.mrf.mxu1  ;;  %v3999_v50 = vmax.f32 %v3743_v37, 0.0  ;;  %v4127_v51 = vmax.f32 %v3871_v38, 0.0 }
 0x17e   : > { %6948 = vst [vmem:[%s8164_s20 + $0x90] sm:$0xff] %v6384_v41   ;;  %7012 = vst [vmem:[%s8164_s20 + $0x290] sm:$0xff] %v6704_v42   ;;  %v3744_v48 = vadd.f32 %v7253_v45, %v8146_v46  ;;  %v3872_v49 = vadd.f32 %v7381_v47, %v8146_v46  ;;  %v3997_v58 = vmax.f32 %v3741_v43, 0.0 }
 0x17f   : > { %v2063_v52 = vpop.f32.mrf.mxu0  ;;  %v2575_v53 = vpop.f32.mrf.mxu1  ;;  %v4125_v59 = vmax.f32 %v3869_v44, 0.0 }
 0x180   : > { %v4000_v54 = vmax.f32 %v3744_v48, 0.0  ;;  %v4128_v55 = vmax.f32 %v3872_v49, 0.0  ;;  %v3742_v56 = vadd.f32 %v8146_v46, %v2063_v52  ;;  %v3870_v57 = vadd.f32 %v8146_v46, %v2575_v53 }
 0x181   : > { %v7256_v60 = vpop.f32.mrf.mxu0  ;;  %v7384_v61 = vpop.f32.mrf.mxu1 }
 0x182   : > { %v6399_v62 = vpack.c.bf16 %v4000_v54, %v3999_v50  ;;  %v6719_v63 = vpack.c.bf16 %v4128_v55, %v4127_v51  ;;  %v3998_v0 = vmax.f32 %v3742_v56, 0.0  ;;  %v4126_v1 = vmax.f32 %v3870_v57, 0.0 }
 0x183   : > { %v3747_v2 = vadd.f32 %v7256_v60, %v8146_v46  ;;  %v3875_v3 = vadd.f32 %v7384_v61, %v8146_v46  ;;  %v2076_v4 = vpop.f32.mrf.mxu0  ;;  %v2588_v5 = vpop.f32.mrf.mxu1 }
 0x184   : > { %6951 = vst [vmem:[%s8164_s20 + $0xa8] sm:$0xff] %v6399_v62   ;;  %7015 = vst [vmem:[%s8164_s20 + $0x2a8] sm:$0xff] %v6719_v63   ;;  %v6394_v6 = vpack.c.bf16 %v3998_v0, %v3997_v58  ;;  %v6714_v7 = vpack.c.bf16 %v4126_v1, %v4125_v59  ;;  %v3745_v8 = vadd.f32 %v8146_v46, %v2076_v4 }
 0x185   : > { %v3873_v9 = vadd.f32 %v8146_v46, %v2588_v5  ;;  %v7257_v10 = vpop.f32.mrf.mxu0  ;;  %v7385_v11 = vpop.f32.mrf.mxu1  ;;  %v4003_v14 = vmax.f32 %v3747_v2, 0.0  ;;  %v4131_v15 = vmax.f32 %v3875_v3, 0.0 }
 0x186   : > { %6950 = vst [vmem:[%s8164_s20 + $0xa0] sm:$0xff] %v6394_v6   ;;  %7014 = vst [vmem:[%s8164_s20 + $0x2a0] sm:$0xff] %v6714_v7   ;;  %v3748_v12 = vadd.f32 %v7257_v10, %v8146_v46  ;;  %v3876_v13 = vadd.f32 %v7385_v11, %v8146_v46  ;;  %v4001_v22 = vmax.f32 %v3745_v8, 0.0 }
 0x187   : > { %v2079_v16 = vpop.f32.mrf.mxu0  ;;  %v2591_v17 = vpop.f32.mrf.mxu1  ;;  %v4129_v23 = vmax.f32 %v3873_v9, 0.0 }
 0x188   : > { %v4004_v18 = vmax.f32 %v3748_v12, 0.0  ;;  %v4132_v19 = vmax.f32 %v3876_v13, 0.0  ;;  %v3746_v20 = vadd.f32 %v8146_v46, %v2079_v16  ;;  %v3874_v21 = vadd.f32 %v8146_v46, %v2591_v17 }
 0x189   : > { %v7260_v24 = vpop.f32.mrf.mxu0  ;;  %v7388_v25 = vpop.f32.mrf.mxu1 }
 0x18a   : > { %v6409_v26 = vpack.c.bf16 %v4004_v18, %v4003_v14  ;;  %v6729_v27 = vpack.c.bf16 %v4132_v19, %v4131_v15  ;;  %v4002_v28 = vmax.f32 %v3746_v20, 0.0  ;;  %v4130_v29 = vmax.f32 %v3874_v21, 0.0 }
 0x18b   : > { %v3751_v30 = vadd.f32 %v7260_v24, %v8146_v46  ;;  %v3879_v31 = vadd.f32 %v7388_v25, %v8146_v46  ;;  %v2092_v32 = vpop.f32.mrf.mxu0  ;;  %v2604_v33 = vpop.f32.mrf.mxu1 }
 0x18c   : > { %6953 = vst [vmem:[%s8164_s20 + $0xb8] sm:$0xff] %v6409_v26   ;;  %7017 = vst [vmem:[%s8164_s20 + $0x2b8] sm:$0xff] %v6729_v27   ;;  %v6404_v34 = vpack.c.bf16 %v4002_v28, %v4001_v22  ;;  %v6724_v35 = vpack.c.bf16 %v4130_v29, %v4129_v23  ;;  %v3749_v36 = vadd.f32 %v8146_v46, %v2092_v32 }
 0x18d   : > { %v3877_v37 = vadd.f32 %v8146_v46, %v2604_v33  ;;  %v7261_v38 = vpop.f32.mrf.mxu0  ;;  %v7389_v39 = vpop.f32.mrf.mxu1  ;;  %v4007_v42 = vmax.f32 %v3751_v30, 0.0  ;;  %v4135_v43 = vmax.f32 %v3879_v31, 0.0  ;;  %v8350_v33 = vld [vmem:[#allocation8] ss:$0 sm:$0xff] }
 0x18e   : > { %6952 = vst [vmem:[%s8164_s20 + $0xb0] sm:$0xff] %v6404_v34   ;;  %7016 = vst [vmem:[%s8164_s20 + $0x2b0] sm:$0xff] %v6724_v35   ;;  %v3752_v40 = vadd.f32 %v7261_v38, %v8146_v46  ;;  %v3880_v41 = vadd.f32 %v7389_v39, %v8146_v46  ;;  %v4005_v51 = vmax.f32 %v3749_v36, 0.0 }
 0x18f   : > { %v2095_v44 = vpop.f32.mrf.mxu0  ;;  %v2607_v45 = vpop.f32.mrf.mxu1  ;;  %v4133_v52 = vmax.f32 %v3877_v37, 0.0 }
 0x190   : > { %v4008_v47 = vmax.f32 %v3752_v40, 0.0  ;;  %v4136_v48 = vmax.f32 %v3880_v41, 0.0  ;;  %v3750_v49 = vadd.f32 %v8146_v46, %v2095_v44  ;;  %v3878_v50 = vadd.f32 %v8146_v46, %v2607_v45 }
 0x191   : > { %v7264_v53 = vpop.f32.mrf.mxu0  ;;  %v7392_v54 = vpop.f32.mrf.mxu1 }
 0x192   : > { %v6419_v55 = vpack.c.bf16 %v4008_v47, %v4007_v42  ;;  %v6739_v56 = vpack.c.bf16 %v4136_v48, %v4135_v43  ;;  %v4006_v57 = vmax.f32 %v3750_v49, 0.0  ;;  %v4134_v58 = vmax.f32 %v3878_v50, 0.0 }
 0x193   : > { %v3755_v59 = vadd.f32 %v7264_v53, %v8146_v46  ;;  %v3883_v60 = vadd.f32 %v7392_v54, %v8146_v46  ;;  %v2108_v61 = vpop.f32.mrf.mxu0  ;;  %v2620_v62 = vpop.f32.mrf.mxu1 }
 0x194   : > { %6955 = vst [vmem:[%s8164_s20 + $0xc8] sm:$0xff] %v6419_v55   ;;  %7019 = vst [vmem:[%s8164_s20 + $0x2c8] sm:$0xff] %v6739_v56   ;;  %v6414_v63 = vpack.c.bf16 %v4006_v57, %v4005_v51  ;;  %v6734_v0 = vpack.c.bf16 %v4134_v58, %v4133_v52  ;;  %v3753_v1 = vadd.f32 %v8146_v46, %v2108_v61 }
 0x195   : > { %v3881_v2 = vadd.f32 %v8146_v46, %v2620_v62  ;;  %v7265_v3 = vpop.f32.mrf.mxu0  ;;  %v7393_v4 = vpop.f32.mrf.mxu1  ;;  %v4011_v7 = vmax.f32 %v3755_v59, 0.0  ;;  %v4139_v8 = vmax.f32 %v3883_v60, 0.0 }
 0x196   : > { %6954 = vst [vmem:[%s8164_s20 + $0xc0] sm:$0xff] %v6414_v63   ;;  %7018 = vst [vmem:[%s8164_s20 + $0x2c0] sm:$0xff] %v6734_v0   ;;  %v3756_v5 = vadd.f32 %v7265_v3, %v8146_v46  ;;  %v3884_v6 = vadd.f32 %v7393_v4, %v8146_v46  ;;  %v4009_v15 = vmax.f32 %v3753_v1, 0.0 }
 0x197   : > { %v2111_v9 = vpop.f32.mrf.mxu0  ;;  %v2623_v10 = vpop.f32.mrf.mxu1  ;;  %v4137_v16 = vmax.f32 %v3881_v2, 0.0 }
 0x198   : > { %v4012_v11 = vmax.f32 %v3756_v5, 0.0  ;;  %v4140_v12 = vmax.f32 %v3884_v6, 0.0  ;;  %v3754_v13 = vadd.f32 %v8146_v46, %v2111_v9  ;;  %v3882_v14 = vadd.f32 %v8146_v46, %v2623_v10 }
 0x199   : > { %v7268_v17 = vpop.f32.mrf.mxu0  ;;  %v7396_v18 = vpop.f32.mrf.mxu1 }
 0x19a   : > { %v6429_v19 = vpack.c.bf16 %v4012_v11, %v4011_v7  ;;  %v6749_v20 = vpack.c.bf16 %v4140_v12, %v4139_v8  ;;  %v4010_v21 = vmax.f32 %v3754_v13, 0.0  ;;  %v4138_v22 = vmax.f32 %v3882_v14, 0.0 }
 0x19b   : > { %v3759_v23 = vadd.f32 %v7268_v17, %v8146_v46  ;;  %v3887_v24 = vadd.f32 %v7396_v18, %v8146_v46  ;;  %v2124_v25 = vpop.f32.mrf.mxu0  ;;  %v2636_v26 = vpop.f32.mrf.mxu1 }
 0x19c   : > { %6957 = vst [vmem:[%s8164_s20 + $0xd8] sm:$0xff] %v6429_v19   ;;  %7021 = vst [vmem:[%s8164_s20 + $0x2d8] sm:$0xff] %v6749_v20   ;;  %v6424_v27 = vpack.c.bf16 %v4010_v21, %v4009_v15  ;;  %v6744_v28 = vpack.c.bf16 %v4138_v22, %v4137_v16  ;;  %v3757_v29 = vadd.f32 %v8146_v46, %v2124_v25 }
 0x19d   : > { %v3885_v30 = vadd.f32 %v8146_v46, %v2636_v26  ;;  %v7269_v31 = vpop.f32.mrf.mxu0  ;;  %v7397_v32 = vpop.f32.mrf.mxu1  ;;  %v4015_v36 = vmax.f32 %v3759_v23, 0.0  ;;  %v4143_v37 = vmax.f32 %v3887_v24, 0.0 }
 0x19e   : > { %6956 = vst [vmem:[%s8164_s20 + $0xd0] sm:$0xff] %v6424_v27   ;;  %7020 = vst [vmem:[%s8164_s20 + $0x2d0] sm:$0xff] %v6744_v28   ;;  %v3760_v34 = vadd.f32 %v8350_v33, %v7269_v31  ;;  %v3888_v35 = vadd.f32 %v8350_v33, %v7397_v32  ;;  %v4013_v43 = vmax.f32 %v3757_v29, 0.0 }
 0x19f   : > { %v2127_v38 = vpop.f32.mrf.mxu0  ;;  %v2639_v39 = vpop.f32.mrf.mxu1  ;;  %v4141_v44 = vmax.f32 %v3885_v30, 0.0 }
 0x1a0   : > { %v4016_v40 = vmax.f32 %v3760_v34, 0.0  ;;  %v4144_v41 = vmax.f32 %v3888_v35, 0.0  ;;  %v3758_v46 = vadd.f32 %v8350_v33, %v2127_v38  ;;  %v3886_v42 = vadd.f32 %v8350_v33, %v2639_v39 }
 0x1a1   : > { %v7272_v45 = vpop.f32.mrf.mxu0  ;;  %v7400_v47 = vpop.f32.mrf.mxu1 }
 0x1a2   : > { %v6439_v48 = vpack.c.bf16 %v4016_v40, %v4015_v36  ;;  %v6759_v49 = vpack.c.bf16 %v4144_v41, %v4143_v37  ;;  %v4014_v50 = vmax.f32 %v3758_v46, 0.0  ;;  %v4142_v51 = vmax.f32 %v3886_v42, 0.0 }
 0x1a3   : > { %v3763_v52 = vadd.f32 %v8350_v33, %v7272_v45  ;;  %v3891_v53 = vadd.f32 %v8350_v33, %v7400_v47  ;;  %v2140_v54 = vpop.f32.mrf.mxu0  ;;  %v2652_v55 = vpop.f32.mrf.mxu1 }
 0x1a4   : > { %6959 = vst [vmem:[%s8164_s20 + $0xe8] sm:$0xff] %v6439_v48   ;;  %7023 = vst [vmem:[%s8164_s20 + $0x2e8] sm:$0xff] %v6759_v49   ;;  %v6434_v56 = vpack.c.bf16 %v4014_v50, %v4013_v43  ;;  %v6754_v57 = vpack.c.bf16 %v4142_v51, %v4141_v44  ;;  %v3761_v58 = vadd.f32 %v8350_v33, %v2140_v54 }
 0x1a5   : > { %v3889_v59 = vadd.f32 %v8350_v33, %v2652_v55  ;;  %v7273_v60 = vpop.f32.mrf.mxu0  ;;  %v7401_v61 = vpop.f32.mrf.mxu1  ;;  %v4019_v0 = vmax.f32 %v3763_v52, 0.0  ;;  %v4147_v1 = vmax.f32 %v3891_v53, 0.0 }
 0x1a6   : > { %6958 = vst [vmem:[%s8164_s20 + $0xe0] sm:$0xff] %v6434_v56   ;;  %7022 = vst [vmem:[%s8164_s20 + $0x2e0] sm:$0xff] %v6754_v57   ;;  %v3764_v62 = vadd.f32 %v8350_v33, %v7273_v60  ;;  %v3892_v63 = vadd.f32 %v8350_v33, %v7401_v61  ;;  %v4017_v8 = vmax.f32 %v3761_v58, 0.0 }
 0x1a7   : > { %v2143_v2 = vpop.f32.mrf.mxu0  ;;  %v2655_v3 = vpop.f32.mrf.mxu1  ;;  %v4145_v9 = vmax.f32 %v3889_v59, 0.0 }
 0x1a8   : > { %v4020_v4 = vmax.f32 %v3764_v62, 0.0  ;;  %v4148_v5 = vmax.f32 %v3892_v63, 0.0  ;;  %v3762_v6 = vadd.f32 %v8350_v33, %v2143_v2  ;;  %v3890_v7 = vadd.f32 %v8350_v33, %v2655_v3 }
 0x1a9   : > { %v7276_v10 = vpop.f32.mrf.mxu0  ;;  %v7404_v11 = vpop.f32.mrf.mxu1 }
 0x1aa   : > { %v6449_v12 = vpack.c.bf16 %v4020_v4, %v4019_v0  ;;  %v6769_v13 = vpack.c.bf16 %v4148_v5, %v4147_v1  ;;  %v4018_v14 = vmax.f32 %v3762_v6, 0.0  ;;  %v4146_v15 = vmax.f32 %v3890_v7, 0.0 }
 0x1ab   : > { %v3767_v16 = vadd.f32 %v8350_v33, %v7276_v10  ;;  %v3895_v17 = vadd.f32 %v8350_v33, %v7404_v11  ;;  %v2156_v18 = vpop.f32.mrf.mxu0  ;;  %v2668_v19 = vpop.f32.mrf.mxu1 }
 0x1ac   : > { %6961 = vst [vmem:[%s8164_s20 + $0xf8] sm:$0xff] %v6449_v12   ;;  %7025 = vst [vmem:[%s8164_s20 + $0x2f8] sm:$0xff] %v6769_v13   ;;  %v6444_v20 = vpack.c.bf16 %v4018_v14, %v4017_v8  ;;  %v6764_v21 = vpack.c.bf16 %v4146_v15, %v4145_v9  ;;  %v3765_v22 = vadd.f32 %v8350_v33, %v2156_v18 }
 0x1ad   : > { %v3893_v23 = vadd.f32 %v8350_v33, %v2668_v19  ;;  %v7277_v24 = vpop.f32.mrf.mxu0  ;;  %v7405_v25 = vpop.f32.mrf.mxu1  ;;  %v4023_v28 = vmax.f32 %v3767_v16, 0.0  ;;  %v4151_v29 = vmax.f32 %v3895_v17, 0.0 }
 0x1ae   : > { %6960 = vst [vmem:[%s8164_s20 + $0xf0] sm:$0xff] %v6444_v20   ;;  %7024 = vst [vmem:[%s8164_s20 + $0x2f0] sm:$0xff] %v6764_v21   ;;  %v3768_v26 = vadd.f32 %v8350_v33, %v7277_v24  ;;  %v3896_v27 = vadd.f32 %v8350_v33, %v7405_v25  ;;  %v4021_v37 = vmax.f32 %v3765_v22, 0.0 }
 0x1af   : > { %v2159_v30 = vpop.f32.mrf.mxu0  ;;  %v2671_v31 = vpop.f32.mrf.mxu1  ;;  %v4149_v38 = vmax.f32 %v3893_v23, 0.0 }
 0x1b0   : > { %v4024_v32 = vmax.f32 %v3768_v26, 0.0  ;;  %v4152_v34 = vmax.f32 %v3896_v27, 0.0  ;;  %v3766_v35 = vadd.f32 %v8350_v33, %v2159_v30  ;;  %v3894_v36 = vadd.f32 %v8350_v33, %v2671_v31 }
 0x1b1   : > { %v7280_v39 = vpop.f32.mrf.mxu0  ;;  %v7408_v40 = vpop.f32.mrf.mxu1 }
 0x1b2   : > { %v6459_v41 = vpack.c.bf16 %v4024_v32, %v4023_v28  ;;  %v6779_v46 = vpack.c.bf16 %v4152_v34, %v4151_v29  ;;  %v4022_v42 = vmax.f32 %v3766_v35, 0.0  ;;  %v4150_v43 = vmax.f32 %v3894_v36, 0.0 }
 0x1b3   : > { %v3771_v44 = vadd.f32 %v8350_v33, %v7280_v39  ;;  %v3899_v45 = vadd.f32 %v8350_v33, %v7408_v40  ;;  %v2172_v47 = vpop.f32.mrf.mxu0  ;;  %v2684_v48 = vpop.f32.mrf.mxu1 }
 0x1b4   : > { %6963 = vst [vmem:[%s8164_s20 + $0x108] sm:$0xff] %v6459_v41   ;;  %7027 = vst [vmem:[%s8164_s20 + $0x308] sm:$0xff] %v6779_v46   ;;  %v6454_v49 = vpack.c.bf16 %v4022_v42, %v4021_v37  ;;  %v6774_v50 = vpack.c.bf16 %v4150_v43, %v4149_v38  ;;  %v3769_v51 = vadd.f32 %v8350_v33, %v2172_v47 }
 0x1b5   : > { %v3897_v52 = vadd.f32 %v8350_v33, %v2684_v48  ;;  %v7281_v53 = vpop.f32.mrf.mxu0  ;;  %v7409_v54 = vpop.f32.mrf.mxu1  ;;  %v4027_v57 = vmax.f32 %v3771_v44, 0.0  ;;  %v4155_v58 = vmax.f32 %v3899_v45, 0.0 }
 0x1b6   : > { %6962 = vst [vmem:[%s8164_s20 + $0x100] sm:$0xff] %v6454_v49   ;;  %7026 = vst [vmem:[%s8164_s20 + $0x300] sm:$0xff] %v6774_v50   ;;  %v3772_v55 = vadd.f32 %v8350_v33, %v7281_v53  ;;  %v3900_v56 = vadd.f32 %v8350_v33, %v7409_v54  ;;  %v4025_v1 = vmax.f32 %v3769_v51, 0.0 }
 0x1b7   : > { %v2175_v59 = vpop.f32.mrf.mxu0  ;;  %v2687_v60 = vpop.f32.mrf.mxu1  ;;  %v4153_v2 = vmax.f32 %v3897_v52, 0.0 }
 0x1b8   : > { %v4028_v61 = vmax.f32 %v3772_v55, 0.0  ;;  %v4156_v62 = vmax.f32 %v3900_v56, 0.0  ;;  %v3770_v63 = vadd.f32 %v8350_v33, %v2175_v59  ;;  %v3898_v0 = vadd.f32 %v8350_v33, %v2687_v60 }
 0x1b9   : > { %v7284_v3 = vpop.f32.mrf.mxu0  ;;  %v7412_v4 = vpop.f32.mrf.mxu1 }
 0x1ba   : > { %v6469_v5 = vpack.c.bf16 %v4028_v61, %v4027_v57  ;;  %v6789_v6 = vpack.c.bf16 %v4156_v62, %v4155_v58  ;;  %v4026_v7 = vmax.f32 %v3770_v63, 0.0  ;;  %v4154_v8 = vmax.f32 %v3898_v0, 0.0 }
 0x1bb   : > { %v3775_v9 = vadd.f32 %v8350_v33, %v7284_v3  ;;  %v3903_v10 = vadd.f32 %v8350_v33, %v7412_v4  ;;  %v2188_v11 = vpop.f32.mrf.mxu0  ;;  %v2700_v12 = vpop.f32.mrf.mxu1 }
 0x1bc   : > { %6965 = vst [vmem:[%s8164_s20 + $0x118] sm:$0xff] %v6469_v5   ;;  %7029 = vst [vmem:[%s8164_s20 + $0x318] sm:$0xff] %v6789_v6   ;;  %v6464_v13 = vpack.c.bf16 %v4026_v7, %v4025_v1  ;;  %v6784_v14 = vpack.c.bf16 %v4154_v8, %v4153_v2  ;;  %v3773_v15 = vadd.f32 %v8350_v33, %v2188_v11 }
 0x1bd   : > { %v3901_v16 = vadd.f32 %v8350_v33, %v2700_v12  ;;  %v7285_v17 = vpop.f32.mrf.mxu0  ;;  %v7413_v18 = vpop.f32.mrf.mxu1  ;;  %v4031_v21 = vmax.f32 %v3775_v9, 0.0  ;;  %v4159_v22 = vmax.f32 %v3903_v10, 0.0 }
 0x1be   : > { %6964 = vst [vmem:[%s8164_s20 + $0x110] sm:$0xff] %v6464_v13   ;;  %7028 = vst [vmem:[%s8164_s20 + $0x310] sm:$0xff] %v6784_v14   ;;  %v3776_v19 = vadd.f32 %v8350_v33, %v7285_v17  ;;  %v3904_v20 = vadd.f32 %v8350_v33, %v7413_v18  ;;  %v4029_v29 = vmax.f32 %v3773_v15, 0.0 }
 0x1bf   : > { %v2191_v23 = vpop.f32.mrf.mxu0  ;;  %v2703_v24 = vpop.f32.mrf.mxu1  ;;  %v4157_v30 = vmax.f32 %v3901_v16, 0.0 }
 0x1c0   : > { %v4032_v25 = vmax.f32 %v3776_v19, 0.0  ;;  %v4160_v26 = vmax.f32 %v3904_v20, 0.0  ;;  %v3774_v27 = vadd.f32 %v8350_v33, %v2191_v23  ;;  %v3902_v28 = vadd.f32 %v8350_v33, %v2703_v24 }
 0x1c1   : > { %v7288_v31 = vpop.f32.mrf.mxu0  ;;  %v7416_v32 = vpop.f32.mrf.mxu1 }
 0x1c2   : > { %v6479_v34 = vpack.c.bf16 %v4032_v25, %v4031_v21  ;;  %v6799_v35 = vpack.c.bf16 %v4160_v26, %v4159_v22  ;;  %v4030_v36 = vmax.f32 %v3774_v27, 0.0  ;;  %v4158_v37 = vmax.f32 %v3902_v28, 0.0 }
 0x1c3   : > { %v3779_v38 = vadd.f32 %v8350_v33, %v7288_v31  ;;  %v3907_v39 = vadd.f32 %v8350_v33, %v7416_v32  ;;  %v2204_v40 = vpop.f32.mrf.mxu0  ;;  %v2716_v41 = vpop.f32.mrf.mxu1 }
 0x1c4   : > { %6967 = vst [vmem:[%s8164_s20 + $0x128] sm:$0xff] %v6479_v34   ;;  %7031 = vst [vmem:[%s8164_s20 + $0x328] sm:$0xff] %v6799_v35   ;;  %v6474_v46 = vpack.c.bf16 %v4030_v36, %v4029_v29  ;;  %v6794_v42 = vpack.c.bf16 %v4158_v37, %v4157_v30  ;;  %v3777_v43 = vadd.f32 %v8350_v33, %v2204_v40 }
 0x1c5   : > { %v3905_v44 = vadd.f32 %v8350_v33, %v2716_v41  ;;  %v7289_v45 = vpop.f32.mrf.mxu0  ;;  %v7417_v47 = vpop.f32.mrf.mxu1  ;;  %v4035_v50 = vmax.f32 %v3779_v38, 0.0  ;;  %v4163_v51 = vmax.f32 %v3907_v39, 0.0 }
 0x1c6   : > { %6966 = vst [vmem:[%s8164_s20 + $0x120] sm:$0xff] %v6474_v46   ;;  %7030 = vst [vmem:[%s8164_s20 + $0x320] sm:$0xff] %v6794_v42   ;;  %v3780_v48 = vadd.f32 %v8350_v33, %v7289_v45  ;;  %v3908_v49 = vadd.f32 %v8350_v33, %v7417_v47  ;;  %v4033_v58 = vmax.f32 %v3777_v43, 0.0 }
 0x1c7   : > { %v2207_v52 = vpop.f32.mrf.mxu0  ;;  %v2719_v53 = vpop.f32.mrf.mxu1  ;;  %v4161_v59 = vmax.f32 %v3905_v44, 0.0 }
 0x1c8   : > { %v4036_v54 = vmax.f32 %v3780_v48, 0.0  ;;  %v4164_v55 = vmax.f32 %v3908_v49, 0.0  ;;  %v3778_v56 = vadd.f32 %v8350_v33, %v2207_v52  ;;  %v3906_v57 = vadd.f32 %v8350_v33, %v2719_v53 }
 0x1c9   : > { %v7292_v60 = vpop.f32.mrf.mxu0  ;;  %v7420_v61 = vpop.f32.mrf.mxu1 }
 0x1ca   : > { %v6489_v62 = vpack.c.bf16 %v4036_v54, %v4035_v50  ;;  %v6809_v63 = vpack.c.bf16 %v4164_v55, %v4163_v51  ;;  %v4034_v0 = vmax.f32 %v3778_v56, 0.0  ;;  %v4162_v1 = vmax.f32 %v3906_v57, 0.0 }
 0x1cb   : > { %v3783_v2 = vadd.f32 %v8350_v33, %v7292_v60  ;;  %v3911_v3 = vadd.f32 %v8350_v33, %v7420_v61  ;;  %v2220_v4 = vpop.f32.mrf.mxu0  ;;  %v2732_v5 = vpop.f32.mrf.mxu1 }
 0x1cc   : > { %6969 = vst [vmem:[%s8164_s20 + $0x138] sm:$0xff] %v6489_v62   ;;  %7033 = vst [vmem:[%s8164_s20 + $0x338] sm:$0xff] %v6809_v63   ;;  %v6484_v6 = vpack.c.bf16 %v4034_v0, %v4033_v58  ;;  %v6804_v7 = vpack.c.bf16 %v4162_v1, %v4161_v59  ;;  %v3781_v8 = vadd.f32 %v8350_v33, %v2220_v4 }
 0x1cd   : > { %v3909_v9 = vadd.f32 %v8350_v33, %v2732_v5  ;;  %v7293_v10 = vpop.f32.mrf.mxu0  ;;  %v7421_v11 = vpop.f32.mrf.mxu1  ;;  %v4039_v14 = vmax.f32 %v3783_v2, 0.0  ;;  %v4167_v15 = vmax.f32 %v3911_v3, 0.0 }
 0x1ce   : > { %6968 = vst [vmem:[%s8164_s20 + $0x130] sm:$0xff] %v6484_v6   ;;  %7032 = vst [vmem:[%s8164_s20 + $0x330] sm:$0xff] %v6804_v7   ;;  %v3784_v12 = vadd.f32 %v8350_v33, %v7293_v10  ;;  %v3912_v13 = vadd.f32 %v8350_v33, %v7421_v11  ;;  %v4037_v22 = vmax.f32 %v3781_v8, 0.0 }
 0x1cf   : > { %v2223_v16 = vpop.f32.mrf.mxu0  ;;  %v2735_v17 = vpop.f32.mrf.mxu1  ;;  %v4165_v23 = vmax.f32 %v3909_v9, 0.0 }
 0x1d0   : > { %v4040_v18 = vmax.f32 %v3784_v12, 0.0  ;;  %v4168_v19 = vmax.f32 %v3912_v13, 0.0  ;;  %v3782_v20 = vadd.f32 %v8350_v33, %v2223_v16  ;;  %v3910_v21 = vadd.f32 %v8350_v33, %v2735_v17 }
 0x1d1   : > { %v7296_v24 = vpop.f32.mrf.mxu0  ;;  %v7424_v25 = vpop.f32.mrf.mxu1 }
 0x1d2   : > { %v6499_v26 = vpack.c.bf16 %v4040_v18, %v4039_v14  ;;  %v6819_v27 = vpack.c.bf16 %v4168_v19, %v4167_v15  ;;  %v4038_v28 = vmax.f32 %v3782_v20, 0.0  ;;  %v4166_v29 = vmax.f32 %v3910_v21, 0.0 }
 0x1d3   : > { %v3787_v30 = vadd.f32 %v8350_v33, %v7296_v24  ;;  %v3915_v31 = vadd.f32 %v8350_v33, %v7424_v25  ;;  %v2236_v32 = vpop.f32.mrf.mxu0  ;;  %v2748_v34 = vpop.f32.mrf.mxu1 }
 0x1d4   : > { %6971 = vst [vmem:[%s8164_s20 + $0x148] sm:$0xff] %v6499_v26   ;;  %7035 = vst [vmem:[%s8164_s20 + $0x348] sm:$0xff] %v6819_v27   ;;  %v6494_v35 = vpack.c.bf16 %v4038_v28, %v4037_v22  ;;  %v6814_v36 = vpack.c.bf16 %v4166_v29, %v4165_v23  ;;  %v3785_v37 = vadd.f32 %v8350_v33, %v2236_v32 }
 0x1d5   : > { %v3913_v38 = vadd.f32 %v8350_v33, %v2748_v34  ;;  %v7297_v39 = vpop.f32.mrf.mxu0  ;;  %v7425_v40 = vpop.f32.mrf.mxu1  ;;  %v4043_v42 = vmax.f32 %v3787_v30, 0.0  ;;  %v4171_v43 = vmax.f32 %v3915_v31, 0.0 }
 0x1d6   : > { %6970 = vst [vmem:[%s8164_s20 + $0x140] sm:$0xff] %v6494_v35   ;;  %7034 = vst [vmem:[%s8164_s20 + $0x340] sm:$0xff] %v6814_v36   ;;  %v3788_v41 = vadd.f32 %v8350_v33, %v7297_v39  ;;  %v3916_v46 = vadd.f32 %v8350_v33, %v7425_v40  ;;  %v4041_v51 = vmax.f32 %v3785_v37, 0.0 }
 0x1d7   : > { %v2239_v44 = vpop.f32.mrf.mxu0  ;;  %v2751_v45 = vpop.f32.mrf.mxu1  ;;  %v4169_v52 = vmax.f32 %v3913_v38, 0.0 }
 0x1d8   : > { %v4044_v47 = vmax.f32 %v3788_v41, 0.0  ;;  %v4172_v48 = vmax.f32 %v3916_v46, 0.0  ;;  %v3786_v49 = vadd.f32 %v8350_v33, %v2239_v44  ;;  %v3914_v50 = vadd.f32 %v8350_v33, %v2751_v45 }
 0x1d9   : > { %v7300_v53 = vpop.f32.mrf.mxu0  ;;  %v7428_v54 = vpop.f32.mrf.mxu1 }
 0x1da   : > { %v6509_v55 = vpack.c.bf16 %v4044_v47, %v4043_v42  ;;  %v6829_v56 = vpack.c.bf16 %v4172_v48, %v4171_v43  ;;  %v4042_v57 = vmax.f32 %v3786_v49, 0.0  ;;  %v4170_v58 = vmax.f32 %v3914_v50, 0.0 }
 0x1db   : > { %v3791_v59 = vadd.f32 %v8350_v33, %v7300_v53  ;;  %v3919_v60 = vadd.f32 %v8350_v33, %v7428_v54  ;;  %v2252_v61 = vpop.f32.mrf.mxu0  ;;  %v2764_v62 = vpop.f32.mrf.mxu1 }
 0x1dc   : > { %6973 = vst [vmem:[%s8164_s20 + $0x158] sm:$0xff] %v6509_v55   ;;  %7037 = vst [vmem:[%s8164_s20 + $0x358] sm:$0xff] %v6829_v56   ;;  %v6504_v63 = vpack.c.bf16 %v4042_v57, %v4041_v51  ;;  %v6824_v0 = vpack.c.bf16 %v4170_v58, %v4169_v52  ;;  %v3789_v1 = vadd.f32 %v8350_v33, %v2252_v61 }
 0x1dd   : > { %v3917_v2 = vadd.f32 %v8350_v33, %v2764_v62  ;;  %v7301_v3 = vpop.f32.mrf.mxu0  ;;  %v7429_v4 = vpop.f32.mrf.mxu1  ;;  %v4047_v7 = vmax.f32 %v3791_v59, 0.0  ;;  %v4175_v8 = vmax.f32 %v3919_v60, 0.0 }
 0x1de   : > { %6972 = vst [vmem:[%s8164_s20 + $0x150] sm:$0xff] %v6504_v63   ;;  %7036 = vst [vmem:[%s8164_s20 + $0x350] sm:$0xff] %v6824_v0   ;;  %v3792_v5 = vadd.f32 %v8350_v33, %v7301_v3  ;;  %v3920_v6 = vadd.f32 %v8350_v33, %v7429_v4  ;;  %v4045_v15 = vmax.f32 %v3789_v1, 0.0 }
 0x1df   : > { %v2255_v9 = vpop.f32.mrf.mxu0  ;;  %v2767_v10 = vpop.f32.mrf.mxu1  ;;  %v4173_v16 = vmax.f32 %v3917_v2, 0.0 }
 0x1e0   : > { %v4048_v11 = vmax.f32 %v3792_v5, 0.0  ;;  %v4176_v12 = vmax.f32 %v3920_v6, 0.0  ;;  %v3790_v13 = vadd.f32 %v8350_v33, %v2255_v9  ;;  %v3918_v14 = vadd.f32 %v8350_v33, %v2767_v10 }
 0x1e1   : > { %v7304_v17 = vpop.f32.mrf.mxu0  ;;  %v7432_v18 = vpop.f32.mrf.mxu1 }
 0x1e2   : > { %v6519_v19 = vpack.c.bf16 %v4048_v11, %v4047_v7  ;;  %v6839_v20 = vpack.c.bf16 %v4176_v12, %v4175_v8  ;;  %v4046_v21 = vmax.f32 %v3790_v13, 0.0  ;;  %v4174_v22 = vmax.f32 %v3918_v14, 0.0 }
 0x1e3   : > { %v3795_v23 = vadd.f32 %v8350_v33, %v7304_v17  ;;  %v3923_v24 = vadd.f32 %v8350_v33, %v7432_v18  ;;  %v2268_v25 = vpop.f32.mrf.mxu0  ;;  %v2780_v26 = vpop.f32.mrf.mxu1 }
 0x1e4   : > { %6975 = vst [vmem:[%s8164_s20 + $0x168] sm:$0xff] %v6519_v19   ;;  %7039 = vst [vmem:[%s8164_s20 + $0x368] sm:$0xff] %v6839_v20   ;;  %v6514_v27 = vpack.c.bf16 %v4046_v21, %v4045_v15  ;;  %v6834_v28 = vpack.c.bf16 %v4174_v22, %v4173_v16  ;;  %v3793_v29 = vadd.f32 %v8350_v33, %v2268_v25 }
 0x1e5   : > { %v3921_v30 = vadd.f32 %v8350_v33, %v2780_v26  ;;  %v7305_v31 = vpop.f32.mrf.mxu0  ;;  %v7433_v32 = vpop.f32.mrf.mxu1  ;;  %v4051_v36 = vmax.f32 %v3795_v23, 0.0  ;;  %v4179_v37 = vmax.f32 %v3923_v24, 0.0 }
 0x1e6   : > { %6974 = vst [vmem:[%s8164_s20 + $0x160] sm:$0xff] %v6514_v27   ;;  %7038 = vst [vmem:[%s8164_s20 + $0x360] sm:$0xff] %v6834_v28   ;;  %v3796_v34 = vadd.f32 %v8350_v33, %v7305_v31  ;;  %v3924_v35 = vadd.f32 %v8350_v33, %v7433_v32  ;;  %v4049_v43 = vmax.f32 %v3793_v29, 0.0 }
 0x1e7   : > { %v2271_v38 = vpop.f32.mrf.mxu0  ;;  %v2783_v39 = vpop.f32.mrf.mxu1  ;;  %v4177_v44 = vmax.f32 %v3921_v30, 0.0 }
 0x1e8   : > { %v4052_v40 = vmax.f32 %v3796_v34, 0.0  ;;  %v4180_v41 = vmax.f32 %v3924_v35, 0.0  ;;  %v3794_v46 = vadd.f32 %v8350_v33, %v2271_v38  ;;  %v3922_v42 = vadd.f32 %v8350_v33, %v2783_v39 }
 0x1e9   : > { %v7308_v45 = vpop.f32.mrf.mxu0  ;;  %v7436_v47 = vpop.f32.mrf.mxu1 }
 0x1ea   : > { %v6529_v48 = vpack.c.bf16 %v4052_v40, %v4051_v36  ;;  %v6849_v49 = vpack.c.bf16 %v4180_v41, %v4179_v37  ;;  %v4050_v50 = vmax.f32 %v3794_v46, 0.0  ;;  %v4178_v51 = vmax.f32 %v3922_v42, 0.0 }
 0x1eb   : > { %v3799_v52 = vadd.f32 %v8350_v33, %v7308_v45  ;;  %v3927_v53 = vadd.f32 %v8350_v33, %v7436_v47  ;;  %v2284_v54 = vpop.f32.mrf.mxu0  ;;  %v2796_v55 = vpop.f32.mrf.mxu1 }
 0x1ec   : > { %6977 = vst [vmem:[%s8164_s20 + $0x178] sm:$0xff] %v6529_v48   ;;  %7041 = vst [vmem:[%s8164_s20 + $0x378] sm:$0xff] %v6849_v49   ;;  %v6524_v56 = vpack.c.bf16 %v4050_v50, %v4049_v43  ;;  %v6844_v57 = vpack.c.bf16 %v4178_v51, %v4177_v44  ;;  %v3797_v58 = vadd.f32 %v8350_v33, %v2284_v54 }
 0x1ed   : > { %v3925_v59 = vadd.f32 %v8350_v33, %v2796_v55  ;;  %v7309_v60 = vpop.f32.mrf.mxu0  ;;  %v7437_v61 = vpop.f32.mrf.mxu1  ;;  %v4055_v0 = vmax.f32 %v3799_v52, 0.0  ;;  %v4183_v1 = vmax.f32 %v3927_v53, 0.0 }
 0x1ee   : > { %6976 = vst [vmem:[%s8164_s20 + $0x170] sm:$0xff] %v6524_v56   ;;  %7040 = vst [vmem:[%s8164_s20 + $0x370] sm:$0xff] %v6844_v57   ;;  %v3800_v62 = vadd.f32 %v8350_v33, %v7309_v60  ;;  %v3928_v63 = vadd.f32 %v8350_v33, %v7437_v61  ;;  %v4053_v8 = vmax.f32 %v3797_v58, 0.0 }
 0x1ef   : > { %v2287_v2 = vpop.f32.mrf.mxu0  ;;  %v2799_v3 = vpop.f32.mrf.mxu1  ;;  %v4181_v9 = vmax.f32 %v3925_v59, 0.0 }
 0x1f0   : > { %v4056_v4 = vmax.f32 %v3800_v62, 0.0  ;;  %v4184_v5 = vmax.f32 %v3928_v63, 0.0  ;;  %v3798_v6 = vadd.f32 %v8350_v33, %v2287_v2  ;;  %v3926_v7 = vadd.f32 %v8350_v33, %v2799_v3 }
 0x1f1   : > { %v7312_v10 = vpop.f32.mrf.mxu0  ;;  %v7440_v11 = vpop.f32.mrf.mxu1 }
 0x1f2   : > { %v6539_v12 = vpack.c.bf16 %v4056_v4, %v4055_v0  ;;  %v6859_v13 = vpack.c.bf16 %v4184_v5, %v4183_v1  ;;  %v4054_v14 = vmax.f32 %v3798_v6, 0.0  ;;  %v4182_v15 = vmax.f32 %v3926_v7, 0.0 }
 0x1f3   : > { %v3803_v16 = vadd.f32 %v8350_v33, %v7312_v10  ;;  %v3931_v17 = vadd.f32 %v8350_v33, %v7440_v11  ;;  %v2300_v18 = vpop.f32.mrf.mxu0  ;;  %v2812_v19 = vpop.f32.mrf.mxu1 }
 0x1f4   : > { %6979 = vst [vmem:[%s8164_s20 + $0x188] sm:$0xff] %v6539_v12   ;;  %7043 = vst [vmem:[%s8164_s20 + $0x388] sm:$0xff] %v6859_v13   ;;  %v6534_v20 = vpack.c.bf16 %v4054_v14, %v4053_v8  ;;  %v6854_v21 = vpack.c.bf16 %v4182_v15, %v4181_v9  ;;  %v3801_v22 = vadd.f32 %v8350_v33, %v2300_v18 }
 0x1f5   : > { %v3929_v23 = vadd.f32 %v8350_v33, %v2812_v19  ;;  %v7313_v24 = vpop.f32.mrf.mxu0  ;;  %v7441_v25 = vpop.f32.mrf.mxu1  ;;  %v4059_v28 = vmax.f32 %v3803_v16, 0.0  ;;  %v4187_v29 = vmax.f32 %v3931_v17, 0.0 }
 0x1f6   : > { %6978 = vst [vmem:[%s8164_s20 + $0x180] sm:$0xff] %v6534_v20   ;;  %7042 = vst [vmem:[%s8164_s20 + $0x380] sm:$0xff] %v6854_v21   ;;  %v3804_v26 = vadd.f32 %v8350_v33, %v7313_v24  ;;  %v3932_v27 = vadd.f32 %v8350_v33, %v7441_v25  ;;  %v4057_v37 = vmax.f32 %v3801_v22, 0.0 }
 0x1f7   : > { %v2303_v30 = vpop.f32.mrf.mxu0  ;;  %v2815_v31 = vpop.f32.mrf.mxu1  ;;  %v4185_v38 = vmax.f32 %v3929_v23, 0.0 }
 0x1f8   : > { %v4060_v32 = vmax.f32 %v3804_v26, 0.0  ;;  %v4188_v34 = vmax.f32 %v3932_v27, 0.0  ;;  %v3802_v35 = vadd.f32 %v8350_v33, %v2303_v30  ;;  %v3930_v36 = vadd.f32 %v8350_v33, %v2815_v31 }
 0x1f9   : > { %v7316_v39 = vpop.f32.mrf.mxu0  ;;  %v7444_v40 = vpop.f32.mrf.mxu1 }
 0x1fa   : > { %v6549_v41 = vpack.c.bf16 %v4060_v32, %v4059_v28  ;;  %v6869_v46 = vpack.c.bf16 %v4188_v34, %v4187_v29  ;;  %v4058_v42 = vmax.f32 %v3802_v35, 0.0  ;;  %v4186_v43 = vmax.f32 %v3930_v36, 0.0 }
 0x1fb   : > { %v3807_v44 = vadd.f32 %v8350_v33, %v7316_v39  ;;  %v3935_v45 = vadd.f32 %v8350_v33, %v7444_v40  ;;  %v2316_v47 = vpop.f32.mrf.mxu0  ;;  %v2828_v48 = vpop.f32.mrf.mxu1 }
 0x1fc   : > { %6981 = vst [vmem:[%s8164_s20 + $0x198] sm:$0xff] %v6549_v41   ;;  %7045 = vst [vmem:[%s8164_s20 + $0x398] sm:$0xff] %v6869_v46   ;;  %v6544_v49 = vpack.c.bf16 %v4058_v42, %v4057_v37  ;;  %v6864_v50 = vpack.c.bf16 %v4186_v43, %v4185_v38  ;;  %v3805_v51 = vadd.f32 %v8350_v33, %v2316_v47 }
 0x1fd   : > { %v3933_v52 = vadd.f32 %v8350_v33, %v2828_v48  ;;  %v7317_v53 = vpop.f32.mrf.mxu0  ;;  %v7445_v54 = vpop.f32.mrf.mxu1  ;;  %v4063_v57 = vmax.f32 %v3807_v44, 0.0  ;;  %v4191_v58 = vmax.f32 %v3935_v45, 0.0 }
 0x1fe   : > { %6980 = vst [vmem:[%s8164_s20 + $0x190] sm:$0xff] %v6544_v49   ;;  %7044 = vst [vmem:[%s8164_s20 + $0x390] sm:$0xff] %v6864_v50   ;;  %v3808_v55 = vadd.f32 %v8350_v33, %v7317_v53  ;;  %v3936_v56 = vadd.f32 %v8350_v33, %v7445_v54  ;;  %v4061_v1 = vmax.f32 %v3805_v51, 0.0 }
 0x1ff   : > { %v2319_v59 = vpop.f32.mrf.mxu0  ;;  %v2831_v60 = vpop.f32.mrf.mxu1  ;;  %v4189_v2 = vmax.f32 %v3933_v52, 0.0 }
 0x200   : > { %v4064_v61 = vmax.f32 %v3808_v55, 0.0  ;;  %v4192_v62 = vmax.f32 %v3936_v56, 0.0  ;;  %v3806_v63 = vadd.f32 %v8350_v33, %v2319_v59  ;;  %v3934_v0 = vadd.f32 %v8350_v33, %v2831_v60 }
 0x201   : > { %v7320_v3 = vpop.f32.mrf.mxu0  ;;  %v7448_v4 = vpop.f32.mrf.mxu1 }
 0x202   : > { %v6559_v5 = vpack.c.bf16 %v4064_v61, %v4063_v57  ;;  %v6879_v6 = vpack.c.bf16 %v4192_v62, %v4191_v58  ;;  %v4062_v7 = vmax.f32 %v3806_v63, 0.0  ;;  %v4190_v8 = vmax.f32 %v3934_v0, 0.0 }
 0x203   : > { %v3811_v9 = vadd.f32 %v8350_v33, %v7320_v3  ;;  %v3939_v10 = vadd.f32 %v8350_v33, %v7448_v4  ;;  %v2332_v11 = vpop.f32.mrf.mxu0  ;;  %v2844_v12 = vpop.f32.mrf.mxu1 }
 0x204   : > { %6983 = vst [vmem:[%s8164_s20 + $0x1a8] sm:$0xff] %v6559_v5   ;;  %7047 = vst [vmem:[%s8164_s20 + $0x3a8] sm:$0xff] %v6879_v6   ;;  %v6554_v13 = vpack.c.bf16 %v4062_v7, %v4061_v1  ;;  %v6874_v14 = vpack.c.bf16 %v4190_v8, %v4189_v2  ;;  %v3809_v15 = vadd.f32 %v8350_v33, %v2332_v11 }
 0x205   : > { %v3937_v16 = vadd.f32 %v8350_v33, %v2844_v12  ;;  %v7321_v17 = vpop.f32.mrf.mxu0  ;;  %v7449_v18 = vpop.f32.mrf.mxu1  ;;  %v4067_v21 = vmax.f32 %v3811_v9, 0.0  ;;  %v4195_v22 = vmax.f32 %v3939_v10, 0.0 }
 0x206   : > { %6982 = vst [vmem:[%s8164_s20 + $0x1a0] sm:$0xff] %v6554_v13   ;;  %7046 = vst [vmem:[%s8164_s20 + $0x3a0] sm:$0xff] %v6874_v14   ;;  %v3812_v19 = vadd.f32 %v8350_v33, %v7321_v17  ;;  %v3940_v20 = vadd.f32 %v8350_v33, %v7449_v18  ;;  %v4065_v29 = vmax.f32 %v3809_v15, 0.0 }
 0x207   : > { %v2335_v23 = vpop.f32.mrf.mxu0  ;;  %v2847_v24 = vpop.f32.mrf.mxu1  ;;  %v4193_v30 = vmax.f32 %v3937_v16, 0.0 }
 0x208   : > { %v4068_v25 = vmax.f32 %v3812_v19, 0.0  ;;  %v4196_v26 = vmax.f32 %v3940_v20, 0.0  ;;  %v3810_v27 = vadd.f32 %v8350_v33, %v2335_v23  ;;  %v3938_v28 = vadd.f32 %v8350_v33, %v2847_v24 }
 0x209   : > { %v7324_v31 = vpop.f32.mrf.mxu0  ;;  %v7452_v32 = vpop.f32.mrf.mxu1 }
 0x20a   : > { %v6569_v34 = vpack.c.bf16 %v4068_v25, %v4067_v21  ;;  %v6889_v35 = vpack.c.bf16 %v4196_v26, %v4195_v22  ;;  %v4066_v36 = vmax.f32 %v3810_v27, 0.0  ;;  %v4194_v37 = vmax.f32 %v3938_v28, 0.0 }
 0x20b   : > { %v3815_v38 = vadd.f32 %v8350_v33, %v7324_v31  ;;  %v3943_v39 = vadd.f32 %v8350_v33, %v7452_v32  ;;  %v2348_v40 = vpop.f32.mrf.mxu0  ;;  %v2860_v41 = vpop.f32.mrf.mxu1 }
 0x20c   : > { %6985 = vst [vmem:[%s8164_s20 + $0x1b8] sm:$0xff] %v6569_v34   ;;  %7049 = vst [vmem:[%s8164_s20 + $0x3b8] sm:$0xff] %v6889_v35   ;;  %v6564_v46 = vpack.c.bf16 %v4066_v36, %v4065_v29  ;;  %v6884_v42 = vpack.c.bf16 %v4194_v37, %v4193_v30  ;;  %v3813_v43 = vadd.f32 %v8350_v33, %v2348_v40 }
 0x20d   : > { %v3941_v44 = vadd.f32 %v8350_v33, %v2860_v41  ;;  %v7325_v45 = vpop.f32.mrf.mxu0  ;;  %v7453_v47 = vpop.f32.mrf.mxu1  ;;  %v4071_v50 = vmax.f32 %v3815_v38, 0.0  ;;  %v4199_v51 = vmax.f32 %v3943_v39, 0.0  ;;  %v7706_v41 = vld [vmem:[#allocation8] ss:$0 sm:$0xff] }
 0x20e   : > { %6984 = vst [vmem:[%s8164_s20 + $0x1b0] sm:$0xff] %v6564_v46   ;;  %7048 = vst [vmem:[%s8164_s20 + $0x3b0] sm:$0xff] %v6884_v42   ;;  %v3816_v48 = vadd.f32 %v8350_v33, %v7325_v45  ;;  %v3944_v49 = vadd.f32 %v8350_v33, %v7453_v47  ;;  %v4069_v58 = vmax.f32 %v3813_v43, 0.0 }
 0x20f   : > { %v2351_v52 = vpop.f32.mrf.mxu0  ;;  %v2863_v53 = vpop.f32.mrf.mxu1  ;;  %v4197_v59 = vmax.f32 %v3941_v44, 0.0 }
 0x210   : > { %v4072_v54 = vmax.f32 %v3816_v48, 0.0  ;;  %v4200_v55 = vmax.f32 %v3944_v49, 0.0  ;;  %v3814_v56 = vadd.f32 %v8350_v33, %v2351_v52  ;;  %v3942_v57 = vadd.f32 %v8350_v33, %v2863_v53 }
 0x211   : > { %v7328_v60 = vpop.f32.mrf.mxu0  ;;  %v7456_v61 = vpop.f32.mrf.mxu1 }
 0x212   : > { %v6579_v62 = vpack.c.bf16 %v4072_v54, %v4071_v50  ;;  %v6899_v63 = vpack.c.bf16 %v4200_v55, %v4199_v51  ;;  %v4070_v0 = vmax.f32 %v3814_v56, 0.0  ;;  %v4198_v1 = vmax.f32 %v3942_v57, 0.0 }
 0x213   : > { %v3819_v2 = vadd.f32 %v8350_v33, %v7328_v60  ;;  %v3947_v3 = vadd.f32 %v8350_v33, %v7456_v61  ;;  %v2364_v4 = vpop.f32.mrf.mxu0  ;;  %v2876_v5 = vpop.f32.mrf.mxu1 }
 0x214   : > { %6987 = vst [vmem:[%s8164_s20 + $0x1c8] sm:$0xff] %v6579_v62   ;;  %7051 = vst [vmem:[%s8164_s20 + $0x3c8] sm:$0xff] %v6899_v63   ;;  %v6574_v6 = vpack.c.bf16 %v4070_v0, %v4069_v58  ;;  %v6894_v7 = vpack.c.bf16 %v4198_v1, %v4197_v59  ;;  %v3817_v8 = vadd.f32 %v8350_v33, %v2364_v4 }
 0x215   : > { %v3945_v9 = vadd.f32 %v8350_v33, %v2876_v5  ;;  %v7329_v10 = vpop.f32.mrf.mxu0  ;;  %v7457_v11 = vpop.f32.mrf.mxu1  ;;  %v4075_v14 = vmax.f32 %v3819_v2, 0.0  ;;  %v4203_v15 = vmax.f32 %v3947_v3, 0.0 }
 0x216   : > { %6986 = vst [vmem:[%s8164_s20 + $0x1c0] sm:$0xff] %v6574_v6   ;;  %7050 = vst [vmem:[%s8164_s20 + $0x3c0] sm:$0xff] %v6894_v7   ;;  %v3820_v12 = vadd.f32 %v8350_v33, %v7329_v10  ;;  %v3948_v13 = vadd.f32 %v8350_v33, %v7457_v11  ;;  %v4073_v22 = vmax.f32 %v3817_v8, 0.0 }
 0x217   : > { %v2367_v16 = vpop.f32.mrf.mxu0  ;;  %v2879_v17 = vpop.f32.mrf.mxu1  ;;  %v4201_v23 = vmax.f32 %v3945_v9, 0.0 }
 0x218   : > { %v4076_v18 = vmax.f32 %v3820_v12, 0.0  ;;  %v4204_v19 = vmax.f32 %v3948_v13, 0.0  ;;  %v3818_v20 = vadd.f32 %v8350_v33, %v2367_v16  ;;  %v3946_v21 = vadd.f32 %v8350_v33, %v2879_v17 }
 0x219   : > { %v7332_v24 = vpop.f32.mrf.mxu0  ;;  %v7460_v25 = vpop.f32.mrf.mxu1 }
 0x21a   : > { %v6589_v26 = vpack.c.bf16 %v4076_v18, %v4075_v14  ;;  %v6909_v27 = vpack.c.bf16 %v4204_v19, %v4203_v15  ;;  %v4074_v28 = vmax.f32 %v3818_v20, 0.0  ;;  %v4202_v29 = vmax.f32 %v3946_v21, 0.0 }
 0x21b   : > { %v3823_v30 = vadd.f32 %v8350_v33, %v7332_v24  ;;  %v3951_v31 = vadd.f32 %v8350_v33, %v7460_v25  ;;  %v2380_v32 = vpop.f32.mrf.mxu0  ;;  %v2892_v34 = vpop.f32.mrf.mxu1 }
 0x21c   : > { %6989 = vst [vmem:[%s8164_s20 + $0x1d8] sm:$0xff] %v6589_v26   ;;  %7053 = vst [vmem:[%s8164_s20 + $0x3d8] sm:$0xff] %v6909_v27   ;;  %v6584_v35 = vpack.c.bf16 %v4074_v28, %v4073_v22  ;;  %v6904_v36 = vpack.c.bf16 %v4202_v29, %v4201_v23  ;;  %v3821_v37 = vadd.f32 %v8350_v33, %v2380_v32 }
 0x21d   : > { %v3949_v38 = vadd.f32 %v8350_v33, %v2892_v34  ;;  %v7333_v39 = vpop.f32.mrf.mxu0  ;;  %v7461_v40 = vpop.f32.mrf.mxu1  ;;  %v4079_v43 = vmax.f32 %v3823_v30, 0.0  ;;  %v4207_v44 = vmax.f32 %v3951_v31, 0.0 }
 0x21e   : > { %6988 = vst [vmem:[%s8164_s20 + $0x1d0] sm:$0xff] %v6584_v35   ;;  %7052 = vst [vmem:[%s8164_s20 + $0x3d0] sm:$0xff] %v6904_v36   ;;  %v3824_v46 = vadd.f32 %v7706_v41, %v7333_v39  ;;  %v3952_v42 = vadd.f32 %v7706_v41, %v7461_v40  ;;  %v4077_v52 = vmax.f32 %v3821_v37, 0.0 }
 0x21f   : > { %v2383_v45 = vpop.f32.mrf.mxu0  ;;  %v2895_v47 = vpop.f32.mrf.mxu1  ;;  %v4205_v53 = vmax.f32 %v3949_v38, 0.0 }
 0x220   : > { %v4080_v48 = vmax.f32 %v3824_v46, 0.0  ;;  %v4208_v49 = vmax.f32 %v3952_v42, 0.0  ;;  %v3822_v50 = vadd.f32 %v7706_v41, %v2383_v45  ;;  %v3950_v51 = vadd.f32 %v7706_v41, %v2895_v47 }
 0x221   : > { %v7336_v33 = vpop.f32.mrf.mxu0  ;;  %v7464_v54 = vpop.f32.mrf.mxu1 }
 0x222   : > { %v6599_v55 = vpack.c.bf16 %v4080_v48, %v4079_v43  ;;  %v6919_v56 = vpack.c.bf16 %v4208_v49, %v4207_v44  ;;  %v4078_v57 = vmax.f32 %v3822_v50, 0.0  ;;  %v4206_v58 = vmax.f32 %v3950_v51, 0.0 }
 0x223   : > { %v3827_v59 = vadd.f32 %v7706_v41, %v7336_v33  ;;  %v3955_v60 = vadd.f32 %v7706_v41, %v7464_v54  ;;  %v2396_v61 = vpop.f32.mrf.mxu0  ;;  %v2908_v62 = vpop.f32.mrf.mxu1 }
 0x224   : > { %6991 = vst [vmem:[%s8164_s20 + $0x1e8] sm:$0xff] %v6599_v55   ;;  %7055 = vst [vmem:[%s8164_s20 + $0x3e8] sm:$0xff] %v6919_v56   ;;  %v6594_v63 = vpack.c.bf16 %v4078_v57, %v4077_v52  ;;  %v6914_v0 = vpack.c.bf16 %v4206_v58, %v4205_v53  ;;  %v3825_v1 = vadd.f32 %v7706_v41, %v2396_v61 }
 0x225   : > { %v3953_v2 = vadd.f32 %v7706_v41, %v2908_v62  ;;  %v7337_v3 = vpop.f32.mrf.mxu0  ;;  %v7465_v4 = vpop.f32.mrf.mxu1  ;;  %v4083_v7 = vmax.f32 %v3827_v59, 0.0  ;;  %v4211_v8 = vmax.f32 %v3955_v60, 0.0 }
 0x226   : > { %6990 = vst [vmem:[%s8164_s20 + $0x1e0] sm:$0xff] %v6594_v63   ;;  %7054 = vst [vmem:[%s8164_s20 + $0x3e0] sm:$0xff] %v6914_v0   ;;  %v3828_v5 = vadd.f32 %v7706_v41, %v7337_v3  ;;  %v3956_v6 = vadd.f32 %v7706_v41, %v7465_v4  ;;  %v4081_v15 = vmax.f32 %v3825_v1, 0.0 }
 0x227   : > { %v2399_v9 = vpop.f32.mrf.mxu0  ;;  %v2911_v10 = vpop.f32.mrf.mxu1  ;;  %v4209_v16 = vmax.f32 %v3953_v2, 0.0 }
 0x228   : > { %v4084_v11 = vmax.f32 %v3828_v5, 0.0  ;;  %v4212_v12 = vmax.f32 %v3956_v6, 0.0  ;;  %v3826_v13 = vadd.f32 %v7706_v41, %v2399_v9  ;;  %v3954_v14 = vadd.f32 %v7706_v41, %v2911_v10 }
 0x22a   : > { %v6609_v17 = vpack.c.bf16 %v4084_v11, %v4083_v7  ;;  %v6929_v18 = vpack.c.bf16 %v4212_v12, %v4211_v8  ;;  %v4082_v19 = vmax.f32 %v3826_v13, 0.0  ;;  %v4210_v20 = vmax.f32 %v3954_v14, 0.0 }
 0x22c   : > { %6993 = vst [vmem:[%s8164_s20 + $0x1f8] sm:$0xff] %v6609_v17   ;;  %7057 = vst [vmem:[%s8164_s20 + $0x3f8] sm:$0xff] %v6929_v18   ;;  %v6604_v21 = vpack.c.bf16 %v4082_v19, %v4081_v15  ;;  %v6924_v22 = vpack.c.bf16 %v4210_v20, %v4209_v16 }
 0x22e   : > { %6992 = vst [vmem:[%s8164_s20 + $0x1f0] sm:$0xff] %v6604_v21   ;;  %7056 = vst [vmem:[%s8164_s20 + $0x3f0] sm:$0xff] %v6924_v22  }
 0x22f   : > { %7800 = shalt.err (!%p7797_p2)
}
 0x230   : > { %s7801_s19 = scalar_lea.hbm %s8553_s9, 16384  ;;  %s7805_s4 = scalar_lea.hbm %s8609_s3, 737280 }
 0x231   : > { %p7802_p9 = scmp.ne.s32.totalorder %s8553_s9, %s7801_s19  ;;  %p7806_p13 = scmp.lt.s32.totalorder %s8553_s9, %s8609_s3 }
 0x232   : > { %p7807_p7 = scmp.lt.s32.totalorder %s7805_s4, %s7801_s19 }
 0x233   : > { %p7803_p11 = pnand %p7802_p9, %p7998_p5 }
 0x234   : > { %p7808_p3 = por %p7807_p7, %p7806_p13 }
 0x235   : > { %p7804_p12 = pneg %p7803_p11 }
 0x237   : > { %p7809_p1 = pnand %p7808_p3, %p7804_p12 }
 0x239   : > { %7812 = shalt.err (!%p7809_p1)
}
 0x23a   : > { %s7879_s20 = smov 64   ;;  %s7880_s22 = smov 4  }
 0x23b   : > { %7492 = dma.vmem_to_hbm [thread:$0]  (%p7998_p5), %s8555_s24, 16384, %s8553_s9, %s5494_s15, %s7879_s20, %s7879_s20, %s7880_s22  }
 0x23c PF: > { %p7514_p4 = scmp.ge.s32.totalorder %s7871_s17, 2  ;;  %s5523_s5 = sand.u32 1, %s7851_s12  }
 0x23d   : > { %p8620_p6 = scmp.ne.s32.totalorder %s8614_s23, 0  ;;  %s5524_s8 = scalar_lea.sflag [#allocation5], %s5523_s5 }
 0x23f   : > { %p7506_p8 = pnand %p7514_p4, %p8620_p6 }
 0x241   : > { %p7507_p0 = pneg %p7506_p8 }
 0x243   : > { %7846 = dma.done.wait (%p7507_p0), %s5524_s8, 16384  }
 0x244   : > { %7848 = vsyncadd (%p7507_p0), %s5524_s8, 4294950912  ;;  %s20_s17 = sadd.s32 1, %s7871_s17   ;;  %s8621_s12 = smov %s7855_s13 }
 0x245   : > { %p17_p10 = scmp.ge.s32.totalorder %s20_s17, 47   ;;  %s8622_s13 = smov %s7859_s14 }
 0x246   : > { %s8623_s14 = smov %s8007_s30  ;;  %s8624_s15 = smov %s7867_s16 }
 0x247   : > { %s8625_s16 = smov %s8627_s18  ;;  %19 = sbr.rel (!%p17_p10) target bundleno = 7 (0x7), region = 95 }
 0x24c   :  { %5529 = vsyncpa [#allocation4], 1 }
 0x24d   :  { %5531 = vsyncpa [#allocation4 + $0x1], 1 }
 0x24e   :  { %5532 = vsyncpa [#allocation7], 1 }
 0x24f   :  { %5533 = vsyncpa [#allocation5], 1 }
 0x250   :  { %5535 = vsyncpa [#allocation5 + $0x1], 1 }

</bundles_post_ra>
